<compile_context>
chip_gen: v6e
topology: v6e:2x2x1
jax: 0.10.0
libtpu: 0.0.40
codegen_flags: <defaults>
</compile_context>

<pallas_src>
import jax
import jax.numpy as jnp
from jax.experimental import pallas as pl
from jax.experimental.pallas import tpu as pltpu

VMEM = pl.BlockSpec(memory_space=pltpu.MemorySpace.VMEM)
SMEM = pl.BlockSpec(memory_space=pltpu.MemorySpace.SMEM)

LANE = 128


def _round_up(n, m):
    return ((n + m - 1) // m) * m


def _pad2(x, rows, cols):
    return jnp.pad(x, ((0, rows - x.shape[0]), (0, cols - x.shape[1])))


def _gnn_fused_kernel(h0_ref, edge_attr_ref, src_ref, dst_ref,
                      we_all_ref, be_all_ref, w1_ref, b1_ref, w2_ref, b2_ref,
                      pool_ref, wp_ref, bp_ref, eps_ref, out_ref):
    """Fused 5-layer GIN + mean pool + graph prediction head (inference)."""
    n_layers = w1_ref.shape[0]
    E = edge_attr_ref.shape[0]
    N = h0_ref.shape[0]
    Hp = h0_ref.shape[1]

    # Gather / scatter one-hot operators built in-register from int32 indices
    # (layer-invariant; built once).  Exact 0/1 values, so the bf16 cast is
    # lossless; bf16 operands halve vreg footprint and feed the MXU natively.
    src_oh = (jax.lax.broadcasted_iota(jnp.int32, (E, N), 1)
              == src_ref[...]).astype(jnp.float32).astype(jnp.bfloat16)   # [E, N]
    dst_oh_t = (jax.lax.broadcasted_iota(jnp.int32, (N, E), 0)
                == dst_ref[...]).astype(jnp.float32).astype(jnp.bfloat16)  # [N, E]

    # Hoisted edge encoder: one wide matmul for all layers (layer-invariant
    # edge_attr).  Result is f32; per-layer slices below are 128-lane aligned.
    edge_emb_all = jnp.dot(edge_attr_ref[...].astype(jnp.bfloat16),
                           we_all_ref[...],
                           preferred_element_type=jnp.float32) + be_all_ref[...]  # [E, L*Hp]

    h = h0_ref[...]                                                       # [N, Hp] f32

    for l in range(n_layers):
        edge_emb = edge_emb_all[:, l * Hp:(l + 1) * Hp]                   # [E, Hp], tile-aligned slice
        # gather x_j = h[src]  (bf16 MXU operands, f32 accumulation)
        xj = jnp.dot(src_oh, h.astype(jnp.bfloat16),
                     preferred_element_type=jnp.float32)                  # [E, Hp]
        # message = relu(x_j + edge_emb); aggr='add' scatter to destination nodes
        msg = jnp.maximum(xj + edge_emb, 0.0)                             # f32 VPU
        aggr = jnp.dot(dst_oh_t, msg.astype(jnp.bfloat16),
                       preferred_element_type=jnp.float32)                # [N, Hp]
        # (1 + eps) * x + aggr    (eps_ref stores 1+eps per layer, SMEM scalar)
        t = eps_ref[l] * h + aggr                                         # f32 VPU
        # mlp: Linear(H,2H) -> [BN folded] -> ReLU -> Linear(2H,H) -> [post-BN folded]
        z1 = jnp.maximum(jnp.dot(t.astype(jnp.bfloat16), w1_ref[l],
                                 preferred_element_type=jnp.float32) + b1_ref[l], 0.0)
        h = jnp.dot(z1.astype(jnp.bfloat16), w2_ref[l],
                    preferred_element_type=jnp.float32) + b2_ref[l]
        if l < n_layers - 1:
            h = jnp.maximum(h, 0.0)        # ReLU on all but the last layer
        # dropout: identity (inference)

    # global mean pooling (dense matmul) + graph prediction Linear(H, C)
    hg = jnp.dot(pool_ref[...], h.astype(jnp.bfloat16),
                 preferred_element_type=jnp.float32)                      # [G, Hp]
    out_ref[...] = jnp.dot(hg.astype(jnp.bfloat16), wp_ref[...],
                           preferred_element_type=jnp.float32) + bp_ref[...]  # [G, Cp]


def gnn_forward(node_x, edge_index, edge_attr, batch, node_emb, layers, wp, bp,
                num_graphs):
    N = node_x.shape[0]
    E = edge_attr.shape[0]
    Fdim = edge_attr.shape[1]
    H = node_emb.shape[1]
    C = wp.shape[1]

    Hp = _round_up(H, LANE)
    H2p = _round_up(2 * H, LANE)
    Cp = _round_up(C, LANE)

    # node_encoder: Embedding(1, H) lookup (tiny; plain JAX).  h0 keeps 128-lane
    # zero padding so padded lanes stay exactly zero through the whole pass.
    h0 = _pad2(node_emb[node_x].astype(jnp.float32), N, Hp)              # [N, Hp]

    # edge_attr is only consumed in-kernel -> no host-side lane padding.
    edge_attr_f = edge_attr.astype(jnp.float32)                          # [E, F]
    src_idx = edge_index[0].astype(jnp.int32).reshape(E, 1)              # [E, 1]
    dst_idx = edge_index[1].astype(jnp.int32).reshape(1, E)              # [1, E]

    # mean-pool matrix [G, N] (entries 0 or 1/count -> bf16-exact here)
    counts = jax.ops.segment_sum(jnp.ones((N,), jnp.float32), batch,
                                 num_segments=num_graphs)
    pool_mat = (jax.nn.one_hot(batch, num_graphs, dtype=jnp.float32).T
                / jnp.maximum(counts, 1.0)[:, None])                     # [G, N]

    # Fold eval-mode BatchNorm into the adjacent Linears, pad lane dims to 128
    # (padded rows/cols/biases are exactly zero), stack per-layer MLP params,
    # and concatenate the edge-encoder params of all layers along the lane dim
    # so the kernel can hoist the edge encoder into one wide matmul.
    we_cols, be_cols = [], []
    w1_s, b1_s, w2_s, b2_s, eps_s = [], [], [], [], []
    for p in layers:
        w1f = p["w1"] * p["s1"]
        b1f = p["b1"] * p["s1"] + p["t1"]
        w2f = p["w2"] * p["s2"]
        b2f = p["b2"] * p["s2"] + p["t2"]
        we_cols.append(_pad2(p["we"], Fdim, Hp))     # [F, Hp]
        be_cols.append(_pad2(p["be"], 1, Hp))        # [1, Hp]
        w1_s.append(_pad2(w1f, Hp, H2p))
        b1_s.append(_pad2(b1f, 1, H2p))
        w2_s.append(_pad2(w2f, H2p, Hp))
        b2_s.append(_pad2(b2f, 1, Hp))
        eps_s.append(1.0 + p["eps"][0])

    we_all = jnp.concatenate(we_cols, axis=1).astype(jnp.bfloat16)       # [F, L*Hp]
    be_all = jnp.concatenate(be_cols, axis=1)                            # [1, L*Hp] f32
    w1_st = jnp.stack(w1_s).astype(jnp.bfloat16)                         # [L, Hp, H2p]
    b1_st = jnp.stack(b1_s)                                              # [L, 1, H2p] f32
    w2_st = jnp.stack(w2_s).astype(jnp.bfloat16)                         # [L, H2p, Hp]
    b2_st = jnp.stack(b2_s)                                              # [L, 1, Hp]  f32
    eps_st = jnp.stack(eps_s).astype(jnp.float32)                        # [L] = 1 + eps

    wp_p = _pad2(wp, Hp, Cp).astype(jnp.bfloat16)                        # [Hp, Cp]
    bp_p = _pad2(bp, 1, Cp)                                              # [1, Cp] f32
    pool_bf = pool_mat.astype(jnp.bfloat16)                              # [G, N]

    out_p = pl.pallas_call(
        _gnn_fused_kernel,
        out_shape=jax.ShapeDtypeStruct((num_graphs, Cp), jnp.float32),
        in_specs=[VMEM] * 13 + [SMEM],
        out_specs=VMEM,
    )(h0, edge_attr_f, src_idx, dst_idx,
      we_all, be_all, w1_st, b1_st, w2_st, b2_st,
      pool_bf, wp_p, bp_p, eps_st)

    return out_p[:, :C]


def _reference_forward(node_x, edge_index, edge_attr, batch, node_emb, layers,
                       wp, bp, num_graphs):
    """Pure-JAX f32 reference (same inference semantics) for correctness check."""
    N = node_x.shape[0]
    src, dst = edge_index[0], edge_index[1]
    h = node_emb[node_x]
    n_layers = len(layers)
    for i, p in enumerate(layers):
        edge_emb = edge_attr @ p["we"] + p["be"]
        msg = jnp.maximum(h[src] + edge_emb, 0.0)
        aggr = jax.ops.segment_sum(msg, dst, num_segments=N)
        t = (1.0 + p["eps"][0]) * h + aggr
        z1 = jnp.maximum((t @ p["w1"] + p["b1"]) * p["s1"] + p["t1"], 0.0)
        h = (z1 @ p["w2"] + p["b2"]) * p["s2"] + p["t2"]
        if i < n_layers - 1:
            h = jnp.maximum(h, 0.0)
    counts = jax.ops.segment_sum(jnp.ones((N,), jnp.float32), batch,
                                 num_segments=num_graphs)
    hg = jax.ops.segment_sum(h, batch, num_segments=num_graphs) / \
        jnp.maximum(counts, 1.0)[:, None]
    return hg @ wp + bp


if __name__ == "__main__":
    N, E, H, G, C, L = 16, 32, 32, 2, 3, 5  # nodes, edges, hid_dim, graphs, classes, layers

    key = jax.random.PRNGKey(0)
    keys = iter(jax.random.split(key, 64))

    # inputs
    node_x = jnp.zeros((N,), jnp.int32)                      # Embedding(1, H) -> indices all 0
    edge_index = jax.random.randint(next(keys), (2, E), 0, N)
    edge_attr = jax.random.normal(next(keys), (E, 7), jnp.float32)
    batch = jnp.concatenate([jnp.zeros(N // 2, jnp.int32),
                             jnp.ones(N // 2, jnp.int32)])

    # deterministic parameter init
    node_emb = 0.1 * jax.random.normal(next(keys), (1, H), jnp.float32)
    bn_eps = 1e-5
    layers = []
    for _ in range(L):
        we = 0.1 * jax.random.normal(next(keys), (7, H), jnp.float32)
        be = 0.1 * jax.random.normal(next(keys), (1, H), jnp.float32)
        w1 = 0.1 * jax.random.normal(next(keys), (H, 2 * H), jnp.float32)
        b1 = 0.1 * jax.random.normal(next(keys), (1, 2 * H), jnp.float32)
        g1 = 1.0 + 0.1 * jax.random.normal(next(keys), (1, 2 * H), jnp.float32)
        beta1 = 0.1 * jax.random.normal(next(keys), (1, 2 * H), jnp.float32)
        w2 = 0.1 * jax.random.normal(next(keys), (2 * H, H), jnp.float32)
        b2 = 0.1 * jax.random.normal(next(keys), (1, H), jnp.float32)
        g2 = 1.0 + 0.1 * jax.random.normal(next(keys), (1, H), jnp.float32)
        beta2 = 0.1 * jax.random.normal(next(keys), (1, H), jnp.float32)
        # fold eval-mode BatchNorm (running_mean=0, running_var=1)
        s1 = g1 / jnp.sqrt(1.0 + bn_eps)
        t1 = beta1
        s2 = g2 / jnp.sqrt(1.0 + bn_eps)
        t2 = beta2
        eps = jnp.zeros((1,), jnp.float32)  # GIN eps parameter, init = 0
        layers.append(dict(we=we, be=be, w1=w1, b1=b1, s1=s1, t1=t1,
                           w2=w2, b2=b2, s2=s2, t2=t2, eps=eps))
    wp = 0.1 * jax.random.normal(next(keys), (H, C), jnp.float32)
    bp = 0.1 * jax.random.normal(next(keys), (1, C), jnp.float32)

    out = gnn_forward(node_x, edge_index, edge_attr, batch,
                      node_emb, layers, wp, bp, G)
    jax.block_until_ready(out)
    assert out.shape == (G, C)

    ref = _reference_forward(node_x, edge_index, edge_attr, batch,
                             node_emb, layers, wp, bp, G)
    # Tolerance accounts for bf16 MXU operands (h/msg/weights truncated to bf16,
    # f32 accumulation) compared against a pure-f32 reference across 5 layers.
    assert jnp.allclose(out, ref, atol=2e-2, rtol=2e-2)

    print("KERNEL_OK")
</pallas_src>

<mosaic_0001>
module attributes {stable_mosaic.version = 11 : i64} {
  func.func @_gnn_fused_kernel(%arg0: memref<16x128xf32, #tpu.memory_space<vmem>>, %arg1: memref<32x7xf32, #tpu.memory_space<vmem>>, %arg2: memref<32x1xi32, #tpu.memory_space<vmem>>, %arg3: memref<1x32xi32, #tpu.memory_space<vmem>>, %arg4: memref<7x640xbf16, #tpu.memory_space<vmem>>, %arg5: memref<1x640xf32, #tpu.memory_space<vmem>>, %arg6: memref<5x128x128xbf16, #tpu.memory_space<vmem>>, %arg7: memref<5x1x128xf32, #tpu.memory_space<vmem>>, %arg8: memref<5x128x128xbf16, #tpu.memory_space<vmem>>, %arg9: memref<5x1x128xf32, #tpu.memory_space<vmem>>, %arg10: memref<2x16xbf16, #tpu.memory_space<vmem>>, %arg11: memref<128x128xbf16, #tpu.memory_space<vmem>>, %arg12: memref<1x128xf32, #tpu.memory_space<vmem>>, %arg13: memref<5xf32, #tpu.memory_space<smem>>, %arg14: memref<2x128xf32, #tpu.memory_space<vmem>>) attributes {dimension_semantics = [], scalar_prefetch = 0 : i64, scratch_operands = 0 : i64, tpu.core_type = #tpu.core_type<tc>} {
    %0 = tpu.iota {dimensions = array<i32: 1>} : vector<32x16xi32>
    %c0 = arith.constant 0 : index
    %c0_0 = arith.constant 0 : index
    %1 = vector.load %arg2[%c0, %c0_0] : memref<32x1xi32, #tpu.memory_space<vmem>>, vector<32x1xi32>
    %2 = vector.broadcast %1 : vector<32x1xi32> to vector<32x16xi32>
    %3 = arith.cmpi eq, %0, %2 : vector<32x16xi32>
    %4 = arith.extui %3 : vector<32x16xi1> to vector<32x16xi32>
    %5 = arith.sitofp %4 : vector<32x16xi32> to vector<32x16xf32>
    %6 = arith.truncf %5 : vector<32x16xf32> to vector<32x16xbf16>
    %7 = tpu.iota {dimensions = array<i32: 0>} : vector<16x32xi32>
    %c0_1 = arith.constant 0 : index
    %c0_2 = arith.constant 0 : index
    %8 = vector.load %arg3[%c0_1, %c0_2] : memref<1x32xi32, #tpu.memory_space<vmem>>, vector<1x32xi32>
    %9 = vector.broadcast %8 : vector<1x32xi32> to vector<16x32xi32>
    %10 = arith.cmpi eq, %7, %9 : vector<16x32xi32>
    %11 = arith.extui %10 : vector<16x32xi1> to vector<16x32xi32>
    %12 = arith.sitofp %11 : vector<16x32xi32> to vector<16x32xf32>
    %13 = arith.truncf %12 : vector<16x32xf32> to vector<16x32xbf16>
    %c0_3 = arith.constant 0 : index
    %c0_4 = arith.constant 0 : index
    %14 = vector.load %arg1[%c0_3, %c0_4] : memref<32x7xf32, #tpu.memory_space<vmem>>, vector<32x7xf32>
    %15 = arith.truncf %14 : vector<32x7xf32> to vector<32x7xbf16>
    %c0_5 = arith.constant 0 : index
    %c0_6 = arith.constant 0 : index
    %16 = vector.load %arg4[%c0_5, %c0_6] : memref<7x640xbf16, #tpu.memory_space<vmem>>, vector<7x640xbf16>
    %cst = arith.constant dense<0.000000e+00> : vector<32x640xf32>
    %17 = tpu.matmul %15, %16, %cst {dimension_numbers = #tpu.dot_dimension_numbers<[1], [0], [0], [1], [0, 0, 1, 1], [], []>} : vector<32x7xbf16>, vector<7x640xbf16>, vector<32x640xf32> -> vector<32x640xf32>
    %c0_7 = arith.constant 0 : index
    %c0_8 = arith.constant 0 : index
    %18 = vector.load %arg5[%c0_7, %c0_8] : memref<1x640xf32, #tpu.memory_space<vmem>>, vector<1x640xf32>
    %19 = vector.broadcast %18 : vector<1x640xf32> to vector<32x640xf32>
    %20 = arith.addf %17, %19 : vector<32x640xf32>
    %c0_9 = arith.constant 0 : index
    %c0_10 = arith.constant 0 : index
    %21 = vector.load %arg0[%c0_9, %c0_10] : memref<16x128xf32, #tpu.memory_space<vmem>>, vector<16x128xf32>
    %22 = vector.extract_strided_slice %20 {offsets = [0, 0], sizes = [32, 128], strides = [1, 1]} : vector<32x640xf32> to vector<32x128xf32>
    %23 = arith.truncf %21 : vector<16x128xf32> to vector<16x128xbf16>
    %cst_11 = arith.constant dense<0.000000e+00> : vector<32x128xf32>
    %24 = tpu.matmul %6, %23, %cst_11 {dimension_numbers = #tpu.dot_dimension_numbers<[1], [0], [0], [1], [0, 0, 1, 1], [], []>} : vector<32x16xbf16>, vector<16x128xbf16>, vector<32x128xf32> -> vector<32x128xf32>
    %25 = arith.addf %24, %22 : vector<32x128xf32>
    %cst_12 = arith.constant 0.000000e+00 : f32
    %26 = vector.broadcast %cst_12 : f32 to vector<32x128xf32>
    %27 = arith.maximumf %25, %26 : vector<32x128xf32>
    %28 = arith.truncf %27 : vector<32x128xf32> to vector<32x128xbf16>
    %cst_13 = arith.constant dense<0.000000e+00> : vector<16x128xf32>
    %29 = tpu.matmul %13, %28, %cst_13 {dimension_numbers = #tpu.dot_dimension_numbers<[1], [0], [0], [1], [0, 0, 1, 1], [], []>} : vector<16x32xbf16>, vector<32x128xbf16>, vector<16x128xf32> -> vector<16x128xf32>
    %c0_14 = arith.constant 0 : index
    %30 = memref.load %arg13[%c0_14] : memref<5xf32, #tpu.memory_space<smem>>
    %31 = vector.broadcast %30 : f32 to vector<16x128xf32>
    %32 = arith.mulf %31, %21 : vector<16x128xf32>
    %33 = arith.addf %32, %29 : vector<16x128xf32>
    %34 = arith.truncf %33 : vector<16x128xf32> to vector<16x128xbf16>
    %c0_15 = arith.constant 0 : index
    %c0_16 = arith.constant 0 : index
    %c0_17 = arith.constant 0 : index
    %35 = vector.load %arg6[%c0_15, %c0_16, %c0_17] : memref<5x128x128xbf16, #tpu.memory_space<vmem>>, vector<1x128x128xbf16>
    %36 = vector.shape_cast %35 : vector<1x128x128xbf16> to vector<128x128xbf16>
    %cst_18 = arith.constant dense<0.000000e+00> : vector<16x128xf32>
    %37 = tpu.matmul %34, %36, %cst_18 {dimension_numbers = #tpu.dot_dimension_numbers<[1], [0], [0], [1], [0, 0, 1, 1], [], []>} : vector<16x128xbf16>, vector<128x128xbf16>, vector<16x128xf32> -> vector<16x128xf32>
    %c0_19 = arith.constant 0 : index
    %c0_20 = arith.constant 0 : index
    %c0_21 = arith.constant 0 : index
    %38 = vector.load %arg7[%c0_19, %c0_20, %c0_21] : memref<5x1x128xf32, #tpu.memory_space<vmem>>, vector<1x1x128xf32>
    %39 = vector.shape_cast %38 : vector<1x1x128xf32> to vector<1x128xf32>
    %40 = vector.broadcast %39 : vector<1x128xf32> to vector<16x128xf32>
    %41 = arith.addf %37, %40 : vector<16x128xf32>
    %cst_22 = arith.constant 0.000000e+00 : f32
    %42 = vector.broadcast %cst_22 : f32 to vector<16x128xf32>
    %43 = arith.maximumf %41, %42 : vector<16x128xf32>
    %44 = arith.truncf %43 : vector<16x128xf32> to vector<16x128xbf16>
    %c0_23 = arith.constant 0 : index
    %c0_24 = arith.constant 0 : index
    %c0_25 = arith.constant 0 : index
    %45 = vector.load %arg8[%c0_23, %c0_24, %c0_25] : memref<5x128x128xbf16, #tpu.memory_space<vmem>>, vector<1x128x128xbf16>
    %46 = vector.shape_cast %45 : vector<1x128x128xbf16> to vector<128x128xbf16>
    %cst_26 = arith.constant dense<0.000000e+00> : vector<16x128xf32>
    %47 = tpu.matmul %44, %46, %cst_26 {dimension_numbers = #tpu.dot_dimension_numbers<[1], [0], [0], [1], [0, 0, 1, 1], [], []>} : vector<16x128xbf16>, vector<128x128xbf16>, vector<16x128xf32> -> vector<16x128xf32>
    %c0_27 = arith.constant 0 : index
    %c0_28 = arith.constant 0 : index
    %c0_29 = arith.constant 0 : index
    %48 = vector.load %arg9[%c0_27, %c0_28, %c0_29] : memref<5x1x128xf32, #tpu.memory_space<vmem>>, vector<1x1x128xf32>
    %49 = vector.shape_cast %48 : vector<1x1x128xf32> to vector<1x128xf32>
    %50 = vector.broadcast %49 : vector<1x128xf32> to vector<16x128xf32>
    %51 = arith.addf %47, %50 : vector<16x128xf32>
    %cst_30 = arith.constant 0.000000e+00 : f32
    %52 = vector.broadcast %cst_30 : f32 to vector<16x128xf32>
    %53 = arith.maximumf %51, %52 : vector<16x128xf32>
    %54 = vector.extract_strided_slice %20 {offsets = [0, 128], sizes = [32, 128], strides = [1, 1]} : vector<32x640xf32> to vector<32x128xf32>
    %55 = arith.truncf %53 : vector<16x128xf32> to vector<16x128xbf16>
    %cst_31 = arith.constant dense<0.000000e+00> : vector<32x128xf32>
    %56 = tpu.matmul %6, %55, %cst_31 {dimension_numbers = #tpu.dot_dimension_numbers<[1], [0], [0], [1], [0, 0, 1, 1], [], []>} : vector<32x16xbf16>, vector<16x128xbf16>, vector<32x128xf32> -> vector<32x128xf32>
    %57 = arith.addf %56, %54 : vector<32x128xf32>
    %cst_32 = arith.constant 0.000000e+00 : f32
    %58 = vector.broadcast %cst_32 : f32 to vector<32x128xf32>
    %59 = arith.maximumf %57, %58 : vector<32x128xf32>
    %60 = arith.truncf %59 : vector<32x128xf32> to vector<32x128xbf16>
    %cst_33 = arith.constant dense<0.000000e+00> : vector<16x128xf32>
    %61 = tpu.matmul %13, %60, %cst_33 {dimension_numbers = #tpu.dot_dimension_numbers<[1], [0], [0], [1], [0, 0, 1, 1], [], []>} : vector<16x32xbf16>, vector<32x128xbf16>, vector<16x128xf32> -> vector<16x128xf32>
    %c1 = arith.constant 1 : index
    %62 = memref.load %arg13[%c1] : memref<5xf32, #tpu.memory_space<smem>>
    %63 = vector.broadcast %62 : f32 to vector<16x128xf32>
    %64 = arith.mulf %63, %53 : vector<16x128xf32>
    %65 = arith.addf %64, %61 : vector<16x128xf32>
    %66 = arith.truncf %65 : vector<16x128xf32> to vector<16x128xbf16>
    %c1_34 = arith.constant 1 : index
    %c0_35 = arith.constant 0 : index
    %c0_36 = arith.constant 0 : index
    %67 = vector.load %arg6[%c1_34, %c0_35, %c0_36] : memref<5x128x128xbf16, #tpu.memory_space<vmem>>, vector<1x128x128xbf16>
    %68 = vector.shape_cast %67 : vector<1x128x128xbf16> to vector<128x128xbf16>
    %cst_37 = arith.constant dense<0.000000e+00> : vector<16x128xf32>
    %69 = tpu.matmul %66, %68, %cst_37 {dimension_numbers = #tpu.dot_dimension_numbers<[1], [0], [0], [1], [0, 0, 1, 1], [], []>} : vector<16x128xbf16>, vector<128x128xbf16>, vector<16x128xf32> -> vector<16x128xf32>
    %c1_38 = arith.constant 1 : index
    %c0_39 = arith.constant 0 : index
    %c0_40 = arith.constant 0 : index
    %70 = vector.load %arg7[%c1_38, %c0_39, %c0_40] : memref<5x1x128xf32, #tpu.memory_space<vmem>>, vector<1x1x128xf32>
    %71 = vector.shape_cast %70 : vector<1x1x128xf32> to vector<1x128xf32>
    %72 = vector.broadcast %71 : vector<1x128xf32> to vector<16x128xf32>
    %73 = arith.addf %69, %72 : vector<16x128xf32>
    %cst_41 = arith.constant 0.000000e+00 : f32
    %74 = vector.broadcast %cst_41 : f32 to vector<16x128xf32>
    %75 = arith.maximumf %73, %74 : vector<16x128xf32>
    %76 = arith.truncf %75 : vector<16x128xf32> to vector<16x128xbf16>
    %c1_42 = arith.constant 1 : index
    %c0_43 = arith.constant 0 : index
    %c0_44 = arith.constant 0 : index
    %77 = vector.load %arg8[%c1_42, %c0_43, %c0_44] : memref<5x128x128xbf16, #tpu.memory_space<vmem>>, vector<1x128x128xbf16>
    %78 = vector.shape_cast %77 : vector<1x128x128xbf16> to vector<128x128xbf16>
    %cst_45 = arith.constant dense<0.000000e+00> : vector<16x128xf32>
    %79 = tpu.matmul %76, %78, %cst_45 {dimension_numbers = #tpu.dot_dimension_numbers<[1], [0], [0], [1], [0, 0, 1, 1], [], []>} : vector<16x128xbf16>, vector<128x128xbf16>, vector<16x128xf32> -> vector<16x128xf32>
    %c1_46 = arith.constant 1 : index
    %c0_47 = arith.constant 0 : index
    %c0_48 = arith.constant 0 : index
    %80 = vector.load %arg9[%c1_46, %c0_47, %c0_48] : memref<5x1x128xf32, #tpu.memory_space<vmem>>, vector<1x1x128xf32>
    %81 = vector.shape_cast %80 : vector<1x1x128xf32> to vector<1x128xf32>
    %82 = vector.broadcast %81 : vector<1x128xf32> to vector<16x128xf32>
    %83 = arith.addf %79, %82 : vector<16x128xf32>
    %cst_49 = arith.constant 0.000000e+00 : f32
    %84 = vector.broadcast %cst_49 : f32 to vector<16x128xf32>
    %85 = arith.maximumf %83, %84 : vector<16x128xf32>
    %86 = vector.extract_strided_slice %20 {offsets = [0, 256], sizes = [32, 128], strides = [1, 1]} : vector<32x640xf32> to vector<32x128xf32>
    %87 = arith.truncf %85 : vector<16x128xf32> to vector<16x128xbf16>
    %cst_50 = arith.constant dense<0.000000e+00> : vector<32x128xf32>
    %88 = tpu.matmul %6, %87, %cst_50 {dimension_numbers = #tpu.dot_dimension_numbers<[1], [0], [0], [1], [0, 0, 1, 1], [], []>} : vector<32x16xbf16>, vector<16x128xbf16>, vector<32x128xf32> -> vector<32x128xf32>
    %89 = arith.addf %88, %86 : vector<32x128xf32>
    %cst_51 = arith.constant 0.000000e+00 : f32
    %90 = vector.broadcast %cst_51 : f32 to vector<32x128xf32>
    %91 = arith.maximumf %89, %90 : vector<32x128xf32>
    %92 = arith.truncf %91 : vector<32x128xf32> to vector<32x128xbf16>
    %cst_52 = arith.constant dense<0.000000e+00> : vector<16x128xf32>
    %93 = tpu.matmul %13, %92, %cst_52 {dimension_numbers = #tpu.dot_dimension_numbers<[1], [0], [0], [1], [0, 0, 1, 1], [], []>} : vector<16x32xbf16>, vector<32x128xbf16>, vector<16x128xf32> -> vector<16x128xf32>
    %c2 = arith.constant 2 : index
    %94 = memref.load %arg13[%c2] : memref<5xf32, #tpu.memory_space<smem>>
    %95 = vector.broadcast %94 : f32 to vector<16x128xf32>
    %96 = arith.mulf %95, %85 : vector<16x128xf32>
    %97 = arith.addf %96, %93 : vector<16x128xf32>
    %98 = arith.truncf %97 : vector<16x128xf32> to vector<16x128xbf16>
    %c2_53 = arith.constant 2 : index
    %c0_54 = arith.constant 0 : index
    %c0_55 = arith.constant 0 : index
    %99 = vector.load %arg6[%c2_53, %c0_54, %c0_55] : memref<5x128x128xbf16, #tpu.memory_space<vmem>>, vector<1x128x128xbf16>
    %100 = vector.shape_cast %99 : vector<1x128x128xbf16> to vector<128x128xbf16>
    %cst_56 = arith.constant dense<0.000000e+00> : vector<16x128xf32>
    %101 = tpu.matmul %98, %100, %cst_56 {dimension_numbers = #tpu.dot_dimension_numbers<[1], [0], [0], [1], [0, 0, 1, 1], [], []>} : vector<16x128xbf16>, vector<128x128xbf16>, vector<16x128xf32> -> vector<16x128xf32>
    %c2_57 = arith.constant 2 : index
    %c0_58 = arith.constant 0 : index
    %c0_59 = arith.constant 0 : index
    %102 = vector.load %arg7[%c2_57, %c0_58, %c0_59] : memref<5x1x128xf32, #tpu.memory_space<vmem>>, vector<1x1x128xf32>
    %103 = vector.shape_cast %102 : vector<1x1x128xf32> to vector<1x128xf32>
    %104 = vector.broadcast %103 : vector<1x128xf32> to vector<16x128xf32>
    %105 = arith.addf %101, %104 : vector<16x128xf32>
    %cst_60 = arith.constant 0.000000e+00 : f32
    %106 = vector.broadcast %cst_60 : f32 to vector<16x128xf32>
    %107 = arith.maximumf %105, %106 : vector<16x128xf32>
    %108 = arith.truncf %107 : vector<16x128xf32> to vector<16x128xbf16>
    %c2_61 = arith.constant 2 : index
    %c0_62 = arith.constant 0 : index
    %c0_63 = arith.constant 0 : index
    %109 = vector.load %arg8[%c2_61, %c0_62, %c0_63] : memref<5x128x128xbf16, #tpu.memory_space<vmem>>, vector<1x128x128xbf16>
    %110 = vector.shape_cast %109 : vector<1x128x128xbf16> to vector<128x128xbf16>
    %cst_64 = arith.constant dense<0.000000e+00> : vector<16x128xf32>
    %111 = tpu.matmul %108, %110, %cst_64 {dimension_numbers = #tpu.dot_dimension_numbers<[1], [0], [0], [1], [0, 0, 1, 1], [], []>} : vector<16x128xbf16>, vector<128x128xbf16>, vector<16x128xf32> -> vector<16x128xf32>
    %c2_65 = arith.constant 2 : index
    %c0_66 = arith.constant 0 : index
    %c0_67 = arith.constant 0 : index
    %112 = vector.load %arg9[%c2_65, %c0_66, %c0_67] : memref<5x1x128xf32, #tpu.memory_space<vmem>>, vector<1x1x128xf32>
    %113 = vector.shape_cast %112 : vector<1x1x128xf32> to vector<1x128xf32>
    %114 = vector.broadcast %113 : vector<1x128xf32> to vector<16x128xf32>
    %115 = arith.addf %111, %114 : vector<16x128xf32>
    %cst_68 = arith.constant 0.000000e+00 : f32
    %116 = vector.broadcast %cst_68 : f32 to vector<16x128xf32>
    %117 = arith.maximumf %115, %116 : vector<16x128xf32>
    %118 = vector.extract_strided_slice %20 {offsets = [0, 384], sizes = [32, 128], strides = [1, 1]} : vector<32x640xf32> to vector<32x128xf32>
    %119 = arith.truncf %117 : vector<16x128xf32> to vector<16x128xbf16>
    %cst_69 = arith.constant dense<0.000000e+00> : vector<32x128xf32>
    %120 = tpu.matmul %6, %119, %cst_69 {dimension_numbers = #tpu.dot_dimension_numbers<[1], [0], [0], [1], [0, 0, 1, 1], [], []>} : vector<32x16xbf16>, vector<16x128xbf16>, vector<32x128xf32> -> vector<32x128xf32>
    %121 = arith.addf %120, %118 : vector<32x128xf32>
    %cst_70 = arith.constant 0.000000e+00 : f32
    %122 = vector.broadcast %cst_70 : f32 to vector<32x128xf32>
    %123 = arith.maximumf %121, %122 : vector<32x128xf32>
    %124 = arith.truncf %123 : vector<32x128xf32> to vector<32x128xbf16>
    %cst_71 = arith.constant dense<0.000000e+00> : vector<16x128xf32>
    %125 = tpu.matmul %13, %124, %cst_71 {dimension_numbers = #tpu.dot_dimension_numbers<[1], [0], [0], [1], [0, 0, 1, 1], [], []>} : vector<16x32xbf16>, vector<32x128xbf16>, vector<16x128xf32> -> vector<16x128xf32>
    %c3 = arith.constant 3 : index
    %126 = memref.load %arg13[%c3] : memref<5xf32, #tpu.memory_space<smem>>
    %127 = vector.broadcast %126 : f32 to vector<16x128xf32>
    %128 = arith.mulf %127, %117 : vector<16x128xf32>
    %129 = arith.addf %128, %125 : vector<16x128xf32>
    %130 = arith.truncf %129 : vector<16x128xf32> to vector<16x128xbf16>
    %c3_72 = arith.constant 3 : index
    %c0_73 = arith.constant 0 : index
    %c0_74 = arith.constant 0 : index
    %131 = vector.load %arg6[%c3_72, %c0_73, %c0_74] : memref<5x128x128xbf16, #tpu.memory_space<vmem>>, vector<1x128x128xbf16>
    %132 = vector.shape_cast %131 : vector<1x128x128xbf16> to vector<128x128xbf16>
    %cst_75 = arith.constant dense<0.000000e+00> : vector<16x128xf32>
    %133 = tpu.matmul %130, %132, %cst_75 {dimension_numbers = #tpu.dot_dimension_numbers<[1], [0], [0], [1], [0, 0, 1, 1], [], []>} : vector<16x128xbf16>, vector<128x128xbf16>, vector<16x128xf32> -> vector<16x128xf32>
    %c3_76 = arith.constant 3 : index
    %c0_77 = arith.constant 0 : index
    %c0_78 = arith.constant 0 : index
    %134 = vector.load %arg7[%c3_76, %c0_77, %c0_78] : memref<5x1x128xf32, #tpu.memory_space<vmem>>, vector<1x1x128xf32>
    %135 = vector.shape_cast %134 : vector<1x1x128xf32> to vector<1x128xf32>
    %136 = vector.broadcast %135 : vector<1x128xf32> to vector<16x128xf32>
    %137 = arith.addf %133, %136 : vector<16x128xf32>
    %cst_79 = arith.constant 0.000000e+00 : f32
    %138 = vector.broadcast %cst_79 : f32 to vector<16x128xf32>
    %139 = arith.maximumf %137, %138 : vector<16x128xf32>
    %140 = arith.truncf %139 : vector<16x128xf32> to vector<16x128xbf16>
    %c3_80 = arith.constant 3 : index
    %c0_81 = arith.constant 0 : index
    %c0_82 = arith.constant 0 : index
    %141 = vector.load %arg8[%c3_80, %c0_81, %c0_82] : memref<5x128x128xbf16, #tpu.memory_space<vmem>>, vector<1x128x128xbf16>
    %142 = vector.shape_cast %141 : vector<1x128x128xbf16> to vector<128x128xbf16>
    %cst_83 = arith.constant dense<0.000000e+00> : vector<16x128xf32>
    %143 = tpu.matmul %140, %142, %cst_83 {dimension_numbers = #tpu.dot_dimension_numbers<[1], [0], [0], [1], [0, 0, 1, 1], [], []>} : vector<16x128xbf16>, vector<128x128xbf16>, vector<16x128xf32> -> vector<16x128xf32>
    %c3_84 = arith.constant 3 : index
    %c0_85 = arith.constant 0 : index
    %c0_86 = arith.constant 0 : index
    %144 = vector.load %arg9[%c3_84, %c0_85, %c0_86] : memref<5x1x128xf32, #tpu.memory_space<vmem>>, vector<1x1x128xf32>
    %145 = vector.shape_cast %144 : vector<1x1x128xf32> to vector<1x128xf32>
    %146 = vector.broadcast %145 : vector<1x128xf32> to vector<16x128xf32>
    %147 = arith.addf %143, %146 : vector<16x128xf32>
    %cst_87 = arith.constant 0.000000e+00 : f32
    %148 = vector.broadcast %cst_87 : f32 to vector<16x128xf32>
    %149 = arith.maximumf %147, %148 : vector<16x128xf32>
    %150 = vector.extract_strided_slice %20 {offsets = [0, 512], sizes = [32, 128], strides = [1, 1]} : vector<32x640xf32> to vector<32x128xf32>
    %151 = arith.truncf %149 : vector<16x128xf32> to vector<16x128xbf16>
    %cst_88 = arith.constant dense<0.000000e+00> : vector<32x128xf32>
    %152 = tpu.matmul %6, %151, %cst_88 {dimension_numbers = #tpu.dot_dimension_numbers<[1], [0], [0], [1], [0, 0, 1, 1], [], []>} : vector<32x16xbf16>, vector<16x128xbf16>, vector<32x128xf32> -> vector<32x128xf32>
    %153 = arith.addf %152, %150 : vector<32x128xf32>
    %cst_89 = arith.constant 0.000000e+00 : f32
    %154 = vector.broadcast %cst_89 : f32 to vector<32x128xf32>
    %155 = arith.maximumf %153, %154 : vector<32x128xf32>
    %156 = arith.truncf %155 : vector<32x128xf32> to vector<32x128xbf16>
    %cst_90 = arith.constant dense<0.000000e+00> : vector<16x128xf32>
    %157 = tpu.matmul %13, %156, %cst_90 {dimension_numbers = #tpu.dot_dimension_numbers<[1], [0], [0], [1], [0, 0, 1, 1], [], []>} : vector<16x32xbf16>, vector<32x128xbf16>, vector<16x128xf32> -> vector<16x128xf32>
    %c4 = arith.constant 4 : index
    %158 = memref.load %arg13[%c4] : memref<5xf32, #tpu.memory_space<smem>>
    %159 = vector.broadcast %158 : f32 to vector<16x128xf32>
    %160 = arith.mulf %159, %149 : vector<16x128xf32>
    %161 = arith.addf %160, %157 : vector<16x128xf32>
    %162 = arith.truncf %161 : vector<16x128xf32> to vector<16x128xbf16>
    %c4_91 = arith.constant 4 : index
    %c0_92 = arith.constant 0 : index
    %c0_93 = arith.constant 0 : index
    %163 = vector.load %arg6[%c4_91, %c0_92, %c0_93] : memref<5x128x128xbf16, #tpu.memory_space<vmem>>, vector<1x128x128xbf16>
    %164 = vector.shape_cast %163 : vector<1x128x128xbf16> to vector<128x128xbf16>
    %cst_94 = arith.constant dense<0.000000e+00> : vector<16x128xf32>
    %165 = tpu.matmul %162, %164, %cst_94 {dimension_numbers = #tpu.dot_dimension_numbers<[1], [0], [0], [1], [0, 0, 1, 1], [], []>} : vector<16x128xbf16>, vector<128x128xbf16>, vector<16x128xf32> -> vector<16x128xf32>
    %c4_95 = arith.constant 4 : index
    %c0_96 = arith.constant 0 : index
    %c0_97 = arith.constant 0 : index
    %166 = vector.load %arg7[%c4_95, %c0_96, %c0_97] : memref<5x1x128xf32, #tpu.memory_space<vmem>>, vector<1x1x128xf32>
    %167 = vector.shape_cast %166 : vector<1x1x128xf32> to vector<1x128xf32>
    %168 = vector.broadcast %167 : vector<1x128xf32> to vector<16x128xf32>
    %169 = arith.addf %165, %168 : vector<16x128xf32>
    %cst_98 = arith.constant 0.000000e+00 : f32
    %170 = vector.broadcast %cst_98 : f32 to vector<16x128xf32>
    %171 = arith.maximumf %169, %170 : vector<16x128xf32>
    %172 = arith.truncf %171 : vector<16x128xf32> to vector<16x128xbf16>
    %c4_99 = arith.constant 4 : index
    %c0_100 = arith.constant 0 : index
    %c0_101 = arith.constant 0 : index
    %173 = vector.load %arg8[%c4_99, %c0_100, %c0_101] : memref<5x128x128xbf16, #tpu.memory_space<vmem>>, vector<1x128x128xbf16>
    %174 = vector.shape_cast %173 : vector<1x128x128xbf16> to vector<128x128xbf16>
    %cst_102 = arith.constant dense<0.000000e+00> : vector<16x128xf32>
    %175 = tpu.matmul %172, %174, %cst_102 {dimension_numbers = #tpu.dot_dimension_numbers<[1], [0], [0], [1], [0, 0, 1, 1], [], []>} : vector<16x128xbf16>, vector<128x128xbf16>, vector<16x128xf32> -> vector<16x128xf32>
    %c4_103 = arith.constant 4 : index
    %c0_104 = arith.constant 0 : index
    %c0_105 = arith.constant 0 : index
    %176 = vector.load %arg9[%c4_103, %c0_104, %c0_105] : memref<5x1x128xf32, #tpu.memory_space<vmem>>, vector<1x1x128xf32>
    %177 = vector.shape_cast %176 : vector<1x1x128xf32> to vector<1x128xf32>
    %178 = vector.broadcast %177 : vector<1x128xf32> to vector<16x128xf32>
    %179 = arith.addf %175, %178 : vector<16x128xf32>
    %c0_106 = arith.constant 0 : index
    %c0_107 = arith.constant 0 : index
    %180 = vector.load %arg10[%c0_106, %c0_107] : memref<2x16xbf16, #tpu.memory_space<vmem>>, vector<2x16xbf16>
    %181 = arith.truncf %179 : vector<16x128xf32> to vector<16x128xbf16>
    %cst_108 = arith.constant dense<0.000000e+00> : vector<2x128xf32>
    %182 = tpu.matmul %180, %181, %cst_108 {dimension_numbers = #tpu.dot_dimension_numbers<[1], [0], [0], [1], [0, 0, 1, 1], [], []>} : vector<2x16xbf16>, vector<16x128xbf16>, vector<2x128xf32> -> vector<2x128xf32>
    %183 = arith.truncf %182 : vector<2x128xf32> to vector<2x128xbf16>
    %c0_109 = arith.constant 0 : index
    %c0_110 = arith.constant 0 : index
    %184 = vector.load %arg11[%c0_109, %c0_110] : memref<128x128xbf16, #tpu.memory_space<vmem>>, vector<128x128xbf16>
    %cst_111 = arith.constant dense<0.000000e+00> : vector<2x128xf32>
    %185 = tpu.matmul %183, %184, %cst_111 {dimension_numbers = #tpu.dot_dimension_numbers<[1], [0], [0], [1], [0, 0, 1, 1], [], []>} : vector<2x128xbf16>, vector<128x128xbf16>, vector<2x128xf32> -> vector<2x128xf32>
    %c0_112 = arith.constant 0 : index
    %c0_113 = arith.constant 0 : index
    %186 = vector.load %arg12[%c0_112, %c0_113] : memref<1x128xf32, #tpu.memory_space<vmem>>, vector<1x128xf32>
    %187 = vector.broadcast %186 : vector<1x128xf32> to vector<2x128xf32>
    %188 = arith.addf %185, %187 : vector<2x128xf32>
    %c0_114 = arith.constant 0 : index
    %c0_115 = arith.constant 0 : index
    %189 = vector.load %arg14[%c0_114, %c0_115] : memref<2x128xf32, #tpu.memory_space<vmem>>, vector<2x128xf32>
    tpu.vector_store %arg14[%c0_114, %c0_115], %188 {strides = array<i32>} : memref<2x128xf32, #tpu.memory_space<vmem>>, vector<2x128xf32>,
    return
  }
}

</mosaic_0001>

<bundles_post_ra>
// kernel: tpu_custom_call.1
= control target key start
LH: loop header
LB: loop body
LE: loop exit
PB: predicated region body
PF: predicated region fallthrough
CT: control target
= control target key end

     0   :  { %19 = vsyncpa [#allocation3], 0  ;;  %s3594_s0 = inlined_call_operand.hbm [shape: f32[16,128], index: 0, kind: input, shape index: {}]   ;;  %s3595_s1 = inlined_call_operand.vmem [shape: f32[32,7], index: 1, kind: input, shape index: {}]   ;;  %s3596_s2 = inlined_call_operand.vmem [shape: s32[32,1], index: 2, kind: input, shape index: {}]   ;;  %s3597_s3 = inlined_call_operand.vmem [shape: s32[1,32], index: 3, kind: input, shape index: {}]   ;;  %s3598_s4 = inlined_call_operand.vmem [shape: bf16[7,640], index: 4, kind: input, shape index: {}]   ;;  %s3599_s5 = inlined_call_operand.vmem [shape: f32[1,640], index: 5, kind: input, shape index: {}]   ;;  %s3600_s6 = inlined_call_operand.hbm [shape: bf16[5,128,128], index: 6, kind: input, shape index: {}]   ;;  %s3601_s7 = inlined_call_operand.hbm [shape: f32[5,1,128], index: 7, kind: input, shape index: {}]   ;;  %s3602_s8 = inlined_call_operand.hbm [shape: bf16[5,128,128], index: 8, kind: input, shape index: {}]   ;;  %s3603_s9 = inlined_call_operand.hbm [shape: f32[5,1,128], index: 9, kind: input, shape index: {}]   ;;  %s3604_s10 = inlined_call_operand.vmem [shape: bf16[2,16], index: 10, kind: input, shape index: {}]   ;;  %s3605_s11 = inlined_call_operand.vmem [shape: bf16[128,128], index: 11, kind: input, shape index: {}]   ;;  %s3606_s12 = inlined_call_operand.vmem [shape: f32[1,128], index: 12, kind: input, shape index: {}]   ;;  %s3607_s13 = inlined_call_operand.vmem [shape: f32[5], index: 13, kind: input, shape index: {}]   ;;  %s3608_s14 = inlined_call_operand.hbm [shape: f32[2,128], index: 14, kind: output, shape index: {}]  }
   0x1   :  { %20 = vsyncpa [#allocation7], 0 }
   0x2   :  { %21 = vsyncpa [#allocation10], 0 }
   0x3   :  { %22 = vsyncpa [#allocation5], 0 }
   0x4   :  { %23 = vsyncpa [#allocation4], 0  ;;  %s3102_s29 = smov [#allocation6]  }
   0x5   :  { %s51_s30 = sshll.u32 %s3102_s29, 4  ;;  %s52_s30 = int_to_ptr.vmem [resolvable:$true] %s51_s30 }
   0x6   :  { %s2968_s15 = scalar_lea.vmem %s52_s30, 5120  ;;  %p2973_p1 = scmp.lt.s32.totalorder %s52_s30, %s52_s30 }
   0x7   :  { %p2969_p0 = scmp.ne.s32.totalorder %s52_s30, %s2968_s15  ;;  %p2974_p2 = scmp.lt.s32.totalorder %s2968_s15, %s2968_s15 }
   0x9   :  { %p2975_p3 = por %p2974_p2, %p2973_p1 }
   0xb   :  { %p2976_p4 = pnand %p2975_p3, %p2969_p0 }
   0xd   :  { %2979 = shalt.err (!%p2976_p4)
}
   0xe   :  { %s3103_s16 = smov 64   ;;  %s3104_s17 = smov 4  }
   0xf   :  { %57 = dma.hbm_to_vmem [thread:$0]  %s3600_s6, 5120, %s52_s30, [#allocation7], %s3103_s16, %s3103_s16, %s3104_s17  }
  0x10   :  { %s3105_s20 = smov [#allocation9]   ;;  %s3106_s22 = smov [#allocation2]  }
  0x11   :  { %s75_s21 = sshll.u32 %s3105_s20, 4  ;;  %s29_s23 = sshll.u32 %s3106_s22, 4  ;;  %s76_s21 = int_to_ptr.vmem [resolvable:$true] %s75_s21  ;;  %s30_s23 = int_to_ptr.vmem [resolvable:$true] %s29_s23 }
  0x12   :  { %s2988_s24 = scalar_lea.vmem %s76_s21, 5120  ;;  %p2993_p6 = scmp.lt.s32.totalorder %s76_s21, %s76_s21 }
  0x13   :  { %p2989_p5 = scmp.ne.s32.totalorder %s76_s21, %s2988_s24  ;;  %p2994_p7 = scmp.lt.s32.totalorder %s2988_s24, %s2988_s24 }
  0x15   :  { %p2995_p8 = por %p2994_p7, %p2993_p6 }
  0x17   :  { %p2996_p9 = pnand %p2995_p8, %p2989_p5 }
  0x19   :  { %2999 = shalt.err (!%p2996_p9)
}
  0x1a   :  { %81 = dma.hbm_to_vmem [thread:$0]  %s3602_s8, 5120, %s76_s21, [#allocation10], %s3103_s16, %s3103_s16, %s3104_s17  }
  0x1b   :  { %s3008_s27 = scalar_lea.vmem %s30_s23, 256  ;;  %p3013_p11 = scmp.lt.s32.totalorder %s30_s23, %s30_s23 }
  0x1c   :  { %p3009_p10 = scmp.ne.s32.totalorder %s30_s23, %s3008_s27  ;;  %p3014_p12 = scmp.lt.s32.totalorder %s3008_s27, %s3008_s27 }
  0x1e   :  { %p3015_p13 = por %p3014_p12, %p3013_p11 }
  0x20   :  { %p3016_p0 = pnand %p3015_p13, %p3009_p10 }
  0x22   :  { %3019 = shalt.err (!%p3016_p0)
}
  0x23   :  { %s3107_s6 = smov 128   ;;  %s3108_s28 = smov 8  }
  0x24   :  { %35 = dma.hbm_to_vmem [thread:$0]  %s3594_s0, 256, %s30_s23, [#allocation3], %s3107_s6, %s3107_s6, %s3108_s28  }
  0x25   :  { %s3109_s15 = smov [#allocation8]  }
  0x26   :  { %s63_s18 = sshll.u32 %s3109_s15, 4  ;;  %s64_s18 = int_to_ptr.vmem [resolvable:$true] %s63_s18 }
  0x27   :  { %s3028_s19 = scalar_lea.vmem %s64_s18, 80  ;;  %s3032_s8 = scalar_lea.vmem %s64_s18, 96 }
  0x28   :  { %p3029_p1 = scmp.ne.s32.totalorder %s64_s18, %s3028_s19  ;;  %p3033_p2 = scmp.lt.s32.totalorder %s64_s18, %s64_s18 }
  0x29   :  { %p3034_p3 = scmp.lt.s32.totalorder %s3032_s8, %s3028_s19 }
  0x2b   :  { %p3035_p4 = por %p3034_p3, %p3033_p2 }
  0x2d   :  { %p3036_p5 = pnand %p3035_p4, %p3029_p1 }
  0x2f   :  { %3039 = shalt.err (!%p3036_p5)
}
  0x30   :  { %s3110_s16 = smov 16   ;;  %s3111_s17 = smov 1  }
  0x31   :  { %69 = dma.hbm_to_vmem [thread:$0]  %s3601_s7, 80, %s64_s18, [#allocation7], %s3110_s16, %s3110_s16, %s3111_s17  }
  0x32   :  { %s106_s0 = sshll.u32 %s3607_s13, 4  ;;  %s3112_s23 = smov [#allocation11]   ;;  %s107_s0 = int_to_ptr.vmem [resolvable:$true] %s106_s0 }
  0x33   :  { %s87_s25 = sshll.u32 %s3112_s23, 4  ;;  %s88_s25 = int_to_ptr.vmem [resolvable:$true] %s87_s25 }
  0x34   :  { %s3048_s26 = scalar_lea.vmem %s88_s25, 80  ;;  %s3052_s27 = scalar_lea.vmem %s88_s25, 96 }
  0x35   :  { %p3049_p6 = scmp.ne.s32.totalorder %s88_s25, %s3048_s26  ;;  %p3053_p7 = scmp.lt.s32.totalorder %s88_s25, %s88_s25 }
  0x36   :  { %p3054_p8 = scmp.lt.s32.totalorder %s3052_s27, %s3048_s26 }
  0x38   :  { %p3055_p9 = por %p3054_p8, %p3053_p7 }
  0x3a   :  { %p3056_p10 = pnand %p3055_p9, %p3049_p6 }
  0x3c   :  { %3059 = shalt.err (!%p3056_p10)
}
  0x3d   :  { %93 = dma.hbm_to_vmem [thread:$0]  %s3603_s9, 80, %s88_s25, [#allocation10], %s3110_s16, %s3110_s16, %s3111_s17  }
  0x3e   :  { %s3060_s7 = scalar_lea.vmem %s107_s0, 16  ;;  %p3065_p12 = scmp.lt.s32.totalorder %s107_s0, %s107_s0 }
  0x3f   :  { %p3061_p11 = scmp.ne.s32.totalorder %s107_s0, %s3060_s7  ;;  %p3066_p13 = scmp.lt.s32.totalorder %s3060_s7, %s3060_s7 }
  0x41   :  { %p3067_p0 = por %p3066_p13, %p3065_p12 }
  0x43   :  { %p3068_p1 = pnand %p3067_p0, %p3061_p11 }
  0x45   :  { %3071 = shalt.err (!%p3068_p1)
}
  0x46   :  { %s3113_s13 = smov [#allocation12]  }
  0x47   :  { %109 = dma.vmem_to_smem %s107_s0, 16, %s3113_s13, [#allocation5]  }
  0x48   :  { %3092 = dma.done.wait [#allocation3], 256  }
  0x49   :  { %3093 = vsyncadd [#allocation3], 4294967040 }
  0x4a   :  { %3094 = dma.done.wait [#allocation7], 5200  }
  0x4b   :  { %3095 = vsyncadd [#allocation7], 4294962096 }
  0x4c   :  { %3096 = dma.done.wait [#allocation10], 5200  }
  0x4d   :  { %3097 = vsyncadd [#allocation10], 4294962096 }
  0x4e   :  { %3098 = dma.done.wait [#allocation5], 16  }
  0x4f   :  { %3099 = vsyncadd [#allocation5], 4294967280 }
  0x50   :  { %128 = sfence }
  0x51   :  { %v134_v0 = vld [vmem:[%s3596_s2 + $0x10] sm:$0xff]  ;;  %v132_v1 = vld [vmem:[%s3596_s2] sm:$0xff]  ;;  %vm233_vm0 = vcmask 1042432   ;;  %vm234_vm1 = vcmask 1043456   ;;  %v3114_v2 = vmov 0   ;;  %v3115_v6 = vmov 65535  }
  0x52   :  { %2866 = vset.pattern.permute.xlu1 %v3114_v2  ;;  %2865 = vset.pattern.permute.xlu0 %v3114_v2  ;;  %v183_v3 = vld [vmem:[%s3598_s4] sm:$0xff]  ;;  %v235_v7 = vsel %vm233_vm0, 4294967295, %v3115_v6  ;;  %v178_v9 = vld [vmem:[%s3595_s1 + $0x8] sm:$0xff]  ;;  %v135_v10 = vld [vmem:[%s3596_s2 + $0x18] sm:$0xff]  ;;  %vm226_vm2 = vcmask 56320   ;;  %v3116_v27 = vmov 0.0   ;;  %v130_v30 = vlaneseq }
  0x53   :  { %v177_v4 = vld [vmem:[%s3595_s1] sm:$0xff]  ;;  %143 = vperm.xlu1 %2866, %v134_v0   ;;  %137 = vperm.xlu0 %2865, %v132_v1   ;;  %v2283_v5 = vcombine.high %v183_v3, %v183_v3  ;;  %v2282_v8 = vcombine.low %v183_v3, %v183_v3  ;;  %v133_v11 = vld [vmem:[%s3596_s2 + $0x8] sm:$0xff]  ;;  %v236_v12 = vsel %vm234_vm1, %v235_v7, 0  ;;  %v179_v24 = vld [vmem:[%s3595_s1 + $0x10] sm:$0xff]  ;;  %vm410_vm7 = vcmask 130048   ;;  %s2339_s9 = sld [smem:[#allocation12 + $0x2]] }
  0x54   :  { %284 = vmatprep.mubr.bf16.mxu1 %v3114_v2  ;;  %v181_v13 = vpack.c.bf16 %v178_v9, %v177_v4  ;;  %v184_v14 = vld [vmem:[%s3598_s4 + $0x8] sm:$0xff]  ;;  %v3236_v19 = vld [vmem:[#allocation2] sm:$0xff]  ;;  %v180_v25 = vld [vmem:[%s3595_s1 + $0x18] sm:$0xff]  ;;  %v131_v31 = vand.u32 127, %v130_v30  ;;  %vm3117_vm8 = vmmov 0   ;;  %v3301_v62 = vshrl.u32 %v130_v30, 7 }
  0x55   :  { %v241_v15 = vand.u32 %v2283_v5, %v236_v12  ;;  %v238_v16 = vand.u32 %v2282_v8, %v236_v12  ;;  %v2284_v17 = vcombine.low %v184_v14, %v184_v14  ;;  %v2285_v18 = vcombine.high %v184_v14, %v184_v14  ;;  %v3238_v20 = vld [vmem:[#allocation2 + $0x8] sm:$0xff]  ;;  %v2871_v28 = vld [vmem:[%s3598_s4 + $0x10] ss:$0 sps:$4 sm:$0xff]   ;;  %v2873_v43 = vld [vmem:[#allocation6 + $0x30] sm:$0xff]   ;;  %s2361_s30 = sld [smem:[#allocation12 + $0x3]]  ;;  %s3118_s13 = smov [#allocation13]  }
  0x56   :  { %2548 = vmatprep.mubr.msk.bf16.mxu0 %vm226_vm2, %v181_v13  ;;  %v409_v23 = vpack.c.bf16 %v3238_v20, %v3236_v19  ;;  %v182_v26 = vpack.c.bf16 %v180_v25, %v179_v24  ;;  %v250_v29 = vand.u32 %v2871_v28, %v236_v12  ;;  %v2872_v42 = vld [vmem:[#allocation6 + $0x38] sm:$0xff]   ;;  %v2874_v44 = vld [vmem:[#allocation6 + $0x28] sm:$0xff]   ;;  %v2875_v45 = vld [vmem:[#allocation6 + $0x20] sm:$0xff]   ;;  %v190_v0 = vsub.s32 0, %v3301_v62  ;;  %s2383_s15 = sld [smem:[#allocation12 + $0x4]]  ;;  %s2263_s29 = sshll.u32 %s3118_s13, 4  ;;  %s2264_s29 = int_to_ptr.vmem [resolvable:$true] %s2263_s29 }
  0x57   :  { %146 = vperm.xlu1 %2866, %v135_v10   ;;  %140 = vperm.xlu0 %2865, %v133_v11   ;;  %v247_v21 = vand.u32 %v2285_v18, %v236_v12  ;;  %v244_v22 = vand.u32 %v2284_v17, %v236_v12  ;;  %v2876_v46 = vld [vmem:[#allocation6 + $0x18] sm:$0xff]   ;;  %v2877_v47 = vld [vmem:[#allocation6 + $0x10] sm:$0xff]   ;;  %v164_v10 = vadd.s32 8, %v3301_v62  ;;  %vm472_vm11 = vcmask 261120   ;;  %v2878_v30 = vld [vmem:[#allocation6 + $0x8] sm:$0xff]   ;;  %p3077_p3 = scmp.lt.s32.totalorder %s2264_s29, %s2264_s29 }
  0x58   :  { %266 = vmatprep.subr.bf16.mxu1 %v241_v15  ;;  %2546 = vmatprep.subr.bf16.mxu0 %v250_v29  ;;  %v3309_v1 = vld [vmem:[%s3599_s5] sm:$0x1f]  ;;  %s2317_s5 = sld [smem:[#allocation12 + $0x1]] }
  0x59   :  { %267 = vmatpush1.bf16.msra.mxu1 %v238_v16  ;;  %2547 = vmatpush3.bf16.msra.mxu0 %v250_v29  ;;  %v191_v3 = vrot.slane %v3309_v1, %v190_v0  ;;  %v2279_v14 = vld [vmem:[%s3597_s3] ss:$0 sm:$0xff]  ;;  %s517_s3 = sld [smem:[#allocation12]] }
  0x5a   :  { %319 = vmatprep.subr.bf16.mxu1 %v247_v21  ;;  %2558 = vmatprep.subr.bf16.mxu0 %v3116_v27  ;;  %vm170_vm9 = vcmp.eq.s32.totalorder %v3301_v62, %v2279_v14  ;;  %vm171_vm10 = vcmp.eq.s32.totalorder %v164_v10, %v2279_v14  ;;  %v2305_v14 = vld [vmem:[#allocation11] ss:$0 sm:$0xff] }
  0x5b   :  { %v2280_v25 = vsel %vm170_vm9, 1.0, %v3116_v27 }
  0x5c   :  { %2287 = vmatmul.mubr.msk.bf16.vlgmr.msra.gmra.mxu1 %vm226_vm2, %v181_v13  ;;  %2549 = vmatmul.mubr.msk.bf16.vlgmr.msra.gmra.mxu0 %vm226_vm2, %v182_v26 }
  0x5d   :  { %294 = vmatprep.mubr.bf16.mxu1 %v3114_v2  ;;  %320 = vmatpush1.bf16.msra.mxu1 %v244_v22 }
  0x5e   :  { %2552 = vmatprep.subr.bf16.mxu1 %v409_v23  ;;  %2562 = vmatprep.mubr.msk.bf16.mxu0 %vm3117_vm8, %v3116_v27 }
  0x64   :  { %2288 = vmatmul.mubr.msk.bf16.gmra.mxu1 %vm226_vm2, %v182_v26 }
  0x65   :  { %337 = vmatprep.mubr.bf16.mxu1 %v3114_v2 }
  0x6c   :  { %2289 = vmatmul.mubr.msk.bf16.vlgmr.msra.gmra.mxu1 %vm226_vm2, %v181_v13 }
  0x6d   :  { %347 = vmatprep.mubr.bf16.mxu1 %v3114_v2  ;;  %2553 = vmatpush3.bf16.msra.mxu1 %v409_v23 }
  0x6e   :  { %2566 = vmatprep.subr.bf16.mxu1 %v3116_v27 }
  0x74   :  { %2290 = vmatmul.mubr.msk.bf16.gmra.mxu1 %vm226_vm2, %v182_v26  ;;  %v2281_v26 = vsel %vm171_vm10, 1.0, %v3116_v27 }
  0x75   :  { %v3322_v29 = vpack.c.bf16 %v2281_v26, %v2280_v25  ;;  %v2888_v26 = vld [vmem:[#allocation6 + $0x78] sm:$0xff]  }
  0xce   :  { %v144_v32 = vpop.permute.xlu1 %143  ;;  %v138_v33 = vpop.permute.xlu0 %137 }
  0xcf   :  { %vm150_vm3 = vcmp.eq.s32.totalorder %v131_v31, %v144_v32  ;;  %vm148_vm4 = vcmp.eq.s32.totalorder %v131_v31, %v138_v33  ;;  %v2880_v32 = vld [vmem:[#allocation9 + $0x38] sm:$0xff]   ;;  %v2881_v33 = vld [vmem:[#allocation9 + $0x30] sm:$0xff]  }
  0xd0   :  { %v2277_v36 = vsel %vm150_vm3, 1.0, %v3116_v27  ;;  %v2275_v37 = vsel %vm148_vm4, 1.0, %v3116_v27 }
  0xd2   :  { %v147_v34 = vpop.permute.xlu1 %146  ;;  %v141_v35 = vpop.permute.xlu0 %140 }
  0xd3   :  { %vm151_vm5 = vcmp.eq.s32.totalorder %v131_v31, %v147_v34  ;;  %vm149_vm6 = vcmp.eq.s32.totalorder %v131_v31, %v141_v35  ;;  %v2879_v31 = vld [vmem:[#allocation6] sm:$0xff]   ;;  %v2882_v34 = vld [vmem:[#allocation9 + $0x28] sm:$0xff]  }
  0xd4   :  { %v2278_v38 = vsel %vm151_vm5, 1.0, %v3116_v27  ;;  %v2276_v39 = vsel %vm149_vm6, 1.0, %v3116_v27  ;;  %v2883_v35 = vld [vmem:[#allocation9 + $0x20] sm:$0xff]  }
  0xd5   :  { %v3263_v40 = vpack.c.bf16 %v2278_v38, %v2277_v36  ;;  %v3265_v41 = vpack.c.bf16 %v2276_v39, %v2275_v37  ;;  %v2884_v36 = vld [vmem:[#allocation9 + $0x18] sm:$0xff]  }
  0xd7   :  { %2554 = vmatprep.mubr.msk.bf16.mxu1 %vm410_vm7, %v3265_v41 }
  0xd8   :  { %2555 = vmatmul.mubr.msk.bf16.vlgmr.msra.gmra.mxu1 %vm410_vm7, %v3263_v40 }
  0xd9   :  { %2582 = vmatprep.mubr.msk.bf16.mxu1 %vm3117_vm8, %v3116_v27  ;;  %2567 = vmatpush3.bf16.msra.mxu1 %v2872_v42 }
  0xda   :  { %2568 = vmatprep.subr.bf16.mxu1 %v3116_v27 }
  0xdd   :  { %2569 = vmatpush3.bf16.msra.mxu1 %v2873_v43  ;;  %v518_v43 = vstv %s517_s3 }
  0xde   :  { %2570 = vmatprep.subr.bf16.mxu1 %v3116_v27 }
  0xe1   :  { %2571 = vmatpush3.bf16.msra.mxu1 %v2874_v44 }
  0xe2   :  { %2572 = vmatprep.subr.bf16.mxu1 %v3116_v27 }
  0xe5   :  { %2573 = vmatpush3.bf16.msra.mxu1 %v2875_v45  ;;  %v519_v45 = vmul.f32 %v518_v43, %v3236_v19  ;;  %v2887_v19 = vld [vmem:[#allocation9] sm:$0xff]  }
  0xe6   :  { %2574 = vmatprep.subr.bf16.mxu1 %v3116_v27 }
  0xe9   :  { %2575 = vmatpush3.bf16.msra.mxu1 %v2876_v46  ;;  %v520_v46 = vmul.f32 %v518_v43, %v3238_v20  ;;  %v2296_v20 = vld [vmem:[#allocation8] ss:$0 sm:$0xff] }
  0xea   :  { %2576 = vmatprep.subr.bf16.mxu1 %v3116_v27 }
  0xed   :  { %2577 = vmatpush3.bf16.msra.mxu1 %v2877_v47 }
  0xee   :  { %2578 = vmatprep.subr.bf16.mxu1 %v3116_v27 }
  0xf1   :  { %2579 = vmatpush3.bf16.msra.mxu1 %v2878_v30  ;;  %v2890_v30 = vld [vmem:[#allocation6 + $0x68] sm:$0xff]  }
  0xf2   :  { %2580 = vmatprep.subr.bf16.mxu1 %v3116_v27 }
  0xf5   :  { %2581 = vmatpush3.bf16.msra.mxu1 %v2879_v31  ;;  %v2891_v31 = vld [vmem:[#allocation6 + $0x60] sm:$0xff]  }
 0x11c   :  { %v286_v48 = vpop.f32.mrf.mxu1  ;;  %v3335_v37 = vpop.f32.mrf.mxu0 }
 0x11d   :  { %v287_v11 = vadd.f32 %v286_v48, %v191_v3 }
 0x11e   :  { %v3281_v49 = vpop.f32.mrf.mxu1  ;;  %v3337_v38 = vpop.f32.mrf.mxu0 }
 0x120   :  { %v290_v50 = vpop.f32.mrf.mxu1  ;;  %v3339_v39 = vpop.f32.mrf.mxu0 }
 0x121   :  { %v291_v12 = vadd.f32 %v290_v50, %v191_v3 }
 0x122   :  { %v3283_v51 = vpop.f32.mrf.mxu1  ;;  %v3341_v42 = vpop.f32.mrf.mxu0 }
 0x124   :  { %v296_v52 = vpop.f32.mrf.mxu1 }
 0x125   :  { %v297_v5 = vadd.f32 %v296_v52, %v191_v3 }
 0x126   :  { %v3285_v53 = vpop.f32.mrf.mxu1 }
 0x128   :  { %v300_v54 = vpop.f32.mrf.mxu1 }
 0x129   :  { %v301_v7 = vadd.f32 %v300_v54, %v191_v3  ;;  %v2885_v3 = vld [vmem:[#allocation9 + $0x10] sm:$0xff]  }
 0x12a   :  { %v3287_v55 = vpop.f32.mrf.mxu1 }
 0x12c   :  { %v3289_v56 = vpop.f32.mrf.mxu1 }
 0x12e   :  { %v3291_v57 = vpop.f32.mrf.mxu1 }
 0x130   :  { %v3293_v58 = vpop.f32.mrf.mxu1 }
 0x132   :  { %v3295_v59 = vpop.f32.mrf.mxu1 }
 0x134   :  { %v3297_v60 = vpop.f32.mrf.mxu1 }
 0x136   :  { %v3299_v61 = vpop.f32.mrf.mxu1 }
 0x138   :  { %v3303_v63 = vpop.f32.mrf.mxu1 }
 0x13a   :  { %v3311_v2 = vpop.f32.mrf.mxu1 }
 0x198   :  { %v2556_v4 = vpop.f32.mrf.mxu1 }
 0x199   :  { %v460_v8 = vadd.f32 %v2556_v4, %v297_v5  ;;  %v2886_v4 = vld [vmem:[#allocation9 + $0x8] sm:$0xff]  }
 0x19a   :  { %v451_v6 = vpop.f32.mrf.mxu1 }
 0x19b   :  { %v468_v16 = vmax.f32 %v460_v8, 0.0  ;;  %v452_v17 = vadd.f32 %v451_v6, %v287_v11 }
 0x19c   :  { %v2557_v9 = vpop.f32.mrf.mxu1 }
 0x19d   :  { %v463_v13 = vadd.f32 %v2557_v9, %v301_v7  ;;  %v466_v24 = vmax.f32 %v452_v17, 0.0 }
 0x19e   :  { %v454_v15 = vpop.f32.mrf.mxu1 }
 0x19f   :  { %v469_v18 = vmax.f32 %v463_v13, 0.0  ;;  %v455_v21 = vadd.f32 %v454_v15, %v291_v12 }
 0x1a1   :  { %v471_v22 = vpack.c.bf16 %v469_v18, %v468_v16  ;;  %v467_v23 = vmax.f32 %v455_v21, 0.0 }
 0x1a3   :  { %2559 = vmatpush3.bf16.msra.mxu0 %v471_v22  ;;  %v470_v28 = vpack.c.bf16 %v467_v23, %v466_v24 }
 0x1a4   :  { %2560 = vmatprep.subr.bf16.mxu0 %v3116_v27 }
 0x1a7   :  { %2561 = vmatpush3.bf16.msra.mxu0 %v470_v28  ;;  %v2889_v28 = vld [vmem:[#allocation6 + $0x70] sm:$0xff]  }
 0x1a8   :  { %2586 = vmatprep.subr.bf16.mxu0 %v3116_v27 }
 0x1aa   :  { %2563 = vmatmul.mubr.msk.bf16.vlgmr.msra.gmra.mxu0 %vm472_vm11, %v3322_v29 }
 0x1ab   :  { %2602 = vmatprep.mubr.msk.bf16.mxu0 %vm3117_vm8, %v3116_v27  ;;  %2587 = vmatpush3.bf16.msra.mxu0 %v2880_v32  ;;  %v2892_v32 = vld [vmem:[#allocation6 + $0x58] sm:$0xff]  }
 0x1ac   :  { %2588 = vmatprep.subr.bf16.mxu0 %v3116_v27 }
 0x1af   :  { %2589 = vmatpush3.bf16.msra.mxu0 %v2881_v33  ;;  %v2893_v33 = vld [vmem:[#allocation6 + $0x50] sm:$0xff]  }
 0x1b0   :  { %2590 = vmatprep.subr.bf16.mxu0 %v3116_v27 }
 0x1b3   :  { %2591 = vmatpush3.bf16.msra.mxu0 %v2882_v34  ;;  %v194_v34 = vsub.s32 1, %v3301_v62 }
 0x1b4   :  { %2592 = vmatprep.subr.bf16.mxu0 %v3116_v27 }
 0x1b7   :  { %2593 = vmatpush3.bf16.msra.mxu0 %v2883_v35  ;;  %v195_v35 = vrot.slane %v3309_v1, %v194_v34 }
 0x1b8   :  { %2594 = vmatprep.subr.bf16.mxu0 %v3116_v27 }
 0x1b9   :  { %v299_v43 = vadd.f32 %v3285_v53, %v195_v35  ;;  %v2896_v53 = vld [vmem:[#allocation9 + $0x78] sm:$0xff]  }
 0x1bb   :  { %2595 = vmatpush3.bf16.msra.mxu0 %v2884_v36 }
 0x1bc   :  { %2596 = vmatprep.subr.bf16.mxu0 %v3116_v27 }
 0x1bf   :  { %2597 = vmatpush3.bf16.msra.mxu0 %v2885_v3 }
 0x1c0   :  { %2598 = vmatprep.subr.bf16.mxu0 %v3116_v27 }
 0x1c3   :  { %2599 = vmatpush3.bf16.msra.mxu0 %v2886_v4 }
 0x1c4   :  { %2600 = vmatprep.subr.bf16.mxu0 %v3116_v27 }
 0x1c7   :  { %2601 = vmatpush3.bf16.msra.mxu0 %v2887_v19 }
 0x1c8   :  { %2612 = vmatprep.subr.bf16.mxu0 %v3116_v27 }
 0x26a   :  { %v510_v44 = vpop.f32.mrf.mxu0 }
 0x26b   :  { %v521_v50 = vadd.f32 %v519_v45, %v510_v44  ;;  %v289_v45 = vadd.f32 %v3281_v49, %v195_v35  ;;  %v2894_v49 = vld [vmem:[#allocation6 + $0x48] sm:$0xff]  }
 0x26c   :  { %v2564_v47 = vpop.f32.mrf.mxu0 }
 0x26e   :  { %v513_v48 = vpop.f32.mrf.mxu0 }
 0x26f   :  { %v522_v52 = vadd.f32 %v520_v46, %v513_v48  ;;  %v303_v46 = vadd.f32 %v3287_v55, %v195_v35  ;;  %v2897_v55 = vld [vmem:[#allocation9 + $0x70] sm:$0xff]  }
 0x270   :  { %v2565_v54 = vpop.f32.mrf.mxu0 }
 0x271   :  { %v523_v0 = vpack.c.bf16 %v522_v52, %v521_v50  ;;  %v293_v50 = vadd.f32 %v3283_v51, %v195_v35  ;;  %v2895_v51 = vld [vmem:[#allocation6 + $0x40] sm:$0xff]  }
 0x273   :  { %2583 = vmatmul.mubr.bf16.vlgmr.msra.gmra.mxu1 %v523_v0 }
 0x274   :  { %2608 = vmatprep.mubr.msk.bf16.mxu1 %vm410_vm7, %v3265_v41 }
 0x333   :  { %v629_v5 = vpop.f32.mrf.mxu1 }
 0x334   :  { %v630_v7 = vadd.f32 %v2296_v20, %v629_v5 }
 0x335   :  { %v2584_v6 = vpop.f32.mrf.mxu1 }
 0x336   :  { %v636_v11 = vmax.f32 %v630_v7, 0.0 }
 0x337   :  { %v632_v8 = vpop.f32.mrf.mxu1 }
 0x338   :  { %v633_v9 = vadd.f32 %v2296_v20, %v632_v8  ;;  %v2898_v8 = vld [vmem:[#allocation9 + $0x68] sm:$0xff]  }
 0x339   :  { %v2585_v10 = vpop.f32.mrf.mxu1 }
 0x33a   :  { %v637_v12 = vmax.f32 %v633_v9, 0.0  ;;  %v2899_v9 = vld [vmem:[#allocation9 + $0x60] sm:$0xff]   ;;  %v2900_v10 = vld [vmem:[#allocation9 + $0x58] sm:$0xff]  }
 0x33c   :  { %v638_v13 = vpack.c.bf16 %v637_v12, %v636_v11  ;;  %v851_v12 = vstv %s2317_s5 }
 0x33e   :  { %2603 = vmatmul.mubr.bf16.vlgmr.msra.gmra.mxu0 %v638_v13 }
 0x33f   :  { %2616 = vmatprep.mubr.msk.bf16.mxu0 %vm3117_vm8, %v3116_v27 }
 0x3fe   :  { %v744_v15 = vpop.f32.mrf.mxu0 }
 0x3ff   :  { %v3352_v17 = vadd.f32 %v2305_v14, %v744_v15 }
 0x400   :  { %v2604_v16 = vpop.f32.mrf.mxu0 }
 0x401   :  { %v751_v23 = vmax.f32 %v3352_v17, 0.0  ;;  %v2903_v17 = vld [vmem:[#allocation9 + $0x40] sm:$0xff]  }
 0x402   :  { %v747_v18 = vpop.f32.mrf.mxu0 }
 0x403   :  { %v3354_v21 = vadd.f32 %v2305_v14, %v747_v18  ;;  %v852_v14 = vmul.f32 %v851_v12, %v751_v23 }
 0x404   :  { %v2605_v22 = vpop.f32.mrf.mxu0 }
 0x405   :  { %v752_v24 = vmax.f32 %v3354_v21, 0.0  ;;  %v2318_v21 = vld [vmem:[#allocation8 + $0x1] ss:$0 sm:$0xff] }
 0x407   :  { %v753_v25 = vpack.c.bf16 %v752_v24, %v751_v23  ;;  %v853_v15 = vmul.f32 %v851_v12, %v752_v24 }
 0x409   :  { %2606 = vmatprep.subr.bf16.mxu1 %v753_v25 }
 0x40a   :  { %2607 = vmatpush3.bf16.msra.mxu1 %v753_v25 }
 0x40b   :  { %2620 = vmatprep.subr.bf16.mxu1 %v3116_v27 }
 0x40d   :  { %2609 = vmatmul.mubr.msk.bf16.vlgmr.msra.gmra.mxu1 %vm410_vm7, %v3263_v40 }
 0x40e   :  { %2636 = vmatprep.mubr.msk.bf16.mxu1 %vm3117_vm8, %v3116_v27  ;;  %2621 = vmatpush3.bf16.msra.mxu1 %v2888_v26 }
 0x40f   :  { %2622 = vmatprep.subr.bf16.mxu1 %v3116_v27 }
 0x412   :  { %2623 = vmatpush3.bf16.msra.mxu1 %v2889_v28  ;;  %v2901_v28 = vld [vmem:[#allocation9 + $0x50] sm:$0xff]  }
 0x413   :  { %2624 = vmatprep.subr.bf16.mxu1 %v3116_v27 }
 0x416   :  { %2625 = vmatpush3.bf16.msra.mxu1 %v2890_v30  ;;  %v2902_v30 = vld [vmem:[#allocation9 + $0x48] sm:$0xff]  }
 0x417   :  { %2626 = vmatprep.subr.bf16.mxu1 %v3116_v27 }
 0x41a   :  { %2627 = vmatpush3.bf16.msra.mxu1 %v2891_v31 }
 0x41b   :  { %2628 = vmatprep.subr.bf16.mxu1 %v3116_v27 }
 0x41e   :  { %2629 = vmatpush3.bf16.msra.mxu1 %v2892_v32 }
 0x41f   :  { %2630 = vmatprep.subr.bf16.mxu1 %v3116_v27 }
 0x422   :  { %2631 = vmatpush3.bf16.msra.mxu1 %v2893_v33 }
 0x423   :  { %2632 = vmatprep.subr.bf16.mxu1 %v3116_v27 }
 0x426   :  { %2633 = vmatpush3.bf16.msra.mxu1 %v2894_v49  ;;  %v198_v49 = vsub.s32 2, %v3301_v62 }
 0x427   :  { %2634 = vmatprep.subr.bf16.mxu1 %v3116_v27 }
 0x42a   :  { %2635 = vmatpush3.bf16.msra.mxu1 %v2895_v51  ;;  %v199_v51 = vrot.slane %v3309_v1, %v198_v49  ;;  %v2349_v49 = vld [vmem:[#allocation11 + $0x2] ss:$0 sm:$0xff] }
 0x4cd   :  { %v2610_v36 = vpop.f32.mrf.mxu1 }
 0x4ce   :  { %v797_v47 = vadd.f32 %v2610_v36, %v299_v43 }
 0x4cf   :  { %v788_v44 = vpop.f32.mrf.mxu1 }
 0x4d0   :  { %v789_v52 = vadd.f32 %v788_v44, %v289_v45  ;;  %v805_v3 = vmax.f32 %v797_v47, 0.0  ;;  %v2327_v44 = vld [vmem:[#allocation11 + $0x1] ss:$0 sm:$0xff] }
 0x4d1   :  { %v2611_v48 = vpop.f32.mrf.mxu1 }
 0x4d2   :  { %v800_v54 = vadd.f32 %v2611_v48, %v303_v46  ;;  %v803_v20 = vmax.f32 %v789_v52, 0.0 }
 0x4d3   :  { %v791_v0 = vpop.f32.mrf.mxu1 }
 0x4d4   :  { %v806_v4 = vmax.f32 %v800_v54, 0.0  ;;  %v792_v19 = vadd.f32 %v791_v0, %v293_v50 }
 0x4d6   :  { %v808_v5 = vpack.c.bf16 %v806_v4, %v805_v3  ;;  %v804_v6 = vmax.f32 %v792_v19, 0.0  ;;  %v2904_v4 = vld [vmem:[#allocation6 + $0xb8] sm:$0xff]   ;;  %v2905_v19 = vld [vmem:[#allocation6 + $0xb0] sm:$0xff]  }
 0x4d8   :  { %v807_v7 = vpack.c.bf16 %v804_v6, %v803_v20  ;;  %2613 = vmatpush3.bf16.msra.mxu0 %v808_v5  ;;  %v2906_v20 = vld [vmem:[#allocation6 + $0xa8] sm:$0xff]   ;;  %v2907_v5 = vld [vmem:[#allocation6 + $0xa0] sm:$0xff]   ;;  %v2908_v6 = vld [vmem:[#allocation6 + $0x98] sm:$0xff]  }
 0x4d9   :  { %2614 = vmatprep.subr.bf16.mxu0 %v3116_v27 }
 0x4dc   :  { %2615 = vmatpush3.bf16.msra.mxu0 %v807_v7  ;;  %v2909_v7 = vld [vmem:[#allocation6 + $0x90] sm:$0xff]  }
 0x4dd   :  { %2640 = vmatprep.subr.bf16.mxu0 %v3116_v27 }
 0x4df   :  { %2617 = vmatmul.mubr.msk.bf16.vlgmr.msra.gmra.mxu0 %vm472_vm11, %v3322_v29 }
 0x4e0   :  { %2656 = vmatprep.mubr.msk.bf16.mxu0 %vm3117_vm8, %v3116_v27  ;;  %2641 = vmatpush3.bf16.msra.mxu0 %v2896_v53 }
 0x4e1   :  { %2642 = vmatprep.subr.bf16.mxu0 %v3116_v27 }
 0x4e4   :  { %2643 = vmatpush3.bf16.msra.mxu0 %v2897_v55  ;;  %v350_v55 = vadd.f32 %v3297_v60, %v199_v51  ;;  %v2912_v60 = vld [vmem:[#allocation9 + $0xb8] sm:$0xff]  }
 0x4e5   :  { %2644 = vmatprep.subr.bf16.mxu0 %v3116_v27 }
 0x4e8   :  { %2645 = vmatpush3.bf16.msra.mxu0 %v2898_v8 }
 0x4e9   :  { %2646 = vmatprep.subr.bf16.mxu0 %v3116_v27 }
 0x4ec   :  { %2647 = vmatpush3.bf16.msra.mxu0 %v2899_v9  ;;  %v340_v9 = vadd.f32 %v3289_v56, %v199_v51  ;;  %v2910_v56 = vld [vmem:[#allocation6 + $0x88] sm:$0xff]  }
 0x4ed   :  { %2648 = vmatprep.subr.bf16.mxu0 %v3116_v27 }
 0x4f0   :  { %2649 = vmatpush3.bf16.msra.mxu0 %v2900_v10  ;;  %v354_v10 = vadd.f32 %v3303_v63, %v199_v51  ;;  %v2913_v63 = vld [vmem:[#allocation9 + $0xb0] sm:$0xff]  }
 0x4f1   :  { %2650 = vmatprep.subr.bf16.mxu0 %v3116_v27 }
 0x4f4   :  { %2651 = vmatpush3.bf16.msra.mxu0 %v2901_v28 }
 0x4f5   :  { %2652 = vmatprep.subr.bf16.mxu0 %v3116_v27 }
 0x4f8   :  { %2653 = vmatpush3.bf16.msra.mxu0 %v2902_v30 }
 0x4f9   :  { %2654 = vmatprep.subr.bf16.mxu0 %v3116_v27 }
 0x4fc   :  { %2655 = vmatpush3.bf16.msra.mxu0 %v2903_v17 }
 0x4fd   :  { %2666 = vmatprep.subr.bf16.mxu0 %v3116_v27 }
 0x59f   :  { %v843_v11 = vpop.f32.mrf.mxu0 }
 0x5a0   :  { %v854_v18 = vadd.f32 %v852_v14, %v843_v11 }
 0x5a1   :  { %v2618_v13 = vpop.f32.mrf.mxu0 }
 0x5a2   :  { %v344_v13 = vadd.f32 %v3293_v58, %v199_v51  ;;  %v2911_v58 = vld [vmem:[#allocation6 + $0x80] sm:$0xff]  }
 0x5a3   :  { %v846_v16 = vpop.f32.mrf.mxu0 }
 0x5a4   :  { %v855_v22 = vadd.f32 %v853_v15, %v846_v16 }
 0x5a5   :  { %v2619_v25 = vpop.f32.mrf.mxu0 }
 0x5a6   :  { %v856_v26 = vpack.c.bf16 %v855_v22, %v854_v18 }
 0x5a8   :  { %2637 = vmatmul.mubr.bf16.vlgmr.msra.gmra.mxu1 %v856_v26 }
 0x5a9   :  { %2662 = vmatprep.mubr.msk.bf16.mxu1 %vm410_vm7, %v3265_v41 }
 0x668   :  { %v964_v23 = vpop.f32.mrf.mxu1 }
 0x669   :  { %v965_v31 = vadd.f32 %v2318_v21, %v964_v23  ;;  %v2915_v23 = vld [vmem:[#allocation9 + $0xa0] sm:$0xff]  }
 0x66a   :  { %v2638_v24 = vpop.f32.mrf.mxu1 }
 0x66b   :  { %v971_v35 = vmax.f32 %v965_v31, 0.0  ;;  %v2916_v24 = vld [vmem:[#allocation9 + $0x98] sm:$0xff]  }
 0x66c   :  { %v967_v32 = vpop.f32.mrf.mxu1 }
 0x66d   :  { %v968_v33 = vadd.f32 %v2318_v21, %v967_v32  ;;  %v2914_v21 = vld [vmem:[#allocation9 + $0xa8] sm:$0xff]   ;;  %v1188_v32 = vstv %s2339_s9 }
 0x66e   :  { %v2639_v34 = vpop.f32.mrf.mxu1 }
 0x66f   :  { %v972_v36 = vmax.f32 %v968_v33, 0.0 }
 0x671   :  { %v973_v43 = vpack.c.bf16 %v972_v36, %v971_v35 }
 0x673   :  { %2657 = vmatmul.mubr.bf16.vlgmr.msra.gmra.mxu0 %v973_v43 }
 0x674   :  { %2670 = vmatprep.mubr.msk.bf16.mxu0 %vm3117_vm8, %v3116_v27 }
 0x733   :  { %v1081_v45 = vpop.f32.mrf.mxu0 }
 0x734   :  { %v3402_v47 = vadd.f32 %v2327_v44, %v1081_v45 }
 0x735   :  { %v2658_v46 = vpop.f32.mrf.mxu0 }
 0x736   :  { %v1088_v54 = vmax.f32 %v3402_v47, 0.0  ;;  %v2919_v47 = vld [vmem:[#allocation9 + $0x80] sm:$0xff]  }
 0x737   :  { %v1084_v48 = vpop.f32.mrf.mxu0 }
 0x738   :  { %v3404_v50 = vadd.f32 %v2327_v44, %v1084_v48  ;;  %v1189_v34 = vmul.f32 %v1188_v32, %v1088_v54  ;;  %v2917_v48 = vld [vmem:[#allocation9 + $0x90] sm:$0xff]  }
 0x739   :  { %v2659_v52 = vpop.f32.mrf.mxu0 }
 0x73a   :  { %v1089_v0 = vmax.f32 %v3404_v50, 0.0  ;;  %v2918_v52 = vld [vmem:[#allocation9 + $0x88] sm:$0xff]   ;;  %v2340_v50 = vld [vmem:[#allocation8 + $0x2] ss:$0 sm:$0xff] }
 0x73c   :  { %v1090_v3 = vpack.c.bf16 %v1089_v0, %v1088_v54  ;;  %v1190_v35 = vmul.f32 %v1188_v32, %v1089_v0 }
 0x73e   :  { %2660 = vmatprep.subr.bf16.mxu1 %v1090_v3 }
 0x73f   :  { %2661 = vmatpush3.bf16.msra.mxu1 %v1090_v3 }
 0x740   :  { %2674 = vmatprep.subr.bf16.mxu1 %v3116_v27 }
 0x742   :  { %2663 = vmatmul.mubr.msk.bf16.vlgmr.msra.gmra.mxu1 %vm410_vm7, %v3263_v40 }
 0x743   :  { %2690 = vmatprep.mubr.msk.bf16.mxu1 %vm3117_vm8, %v3116_v27  ;;  %2675 = vmatpush3.bf16.msra.mxu1 %v2904_v4 }
 0x744   :  { %2676 = vmatprep.subr.bf16.mxu1 %v3116_v27 }
 0x747   :  { %2677 = vmatpush3.bf16.msra.mxu1 %v2905_v19 }
 0x748   :  { %2678 = vmatprep.subr.bf16.mxu1 %v3116_v27 }
 0x74b   :  { %2679 = vmatpush3.bf16.msra.mxu1 %v2906_v20 }
 0x74c   :  { %2680 = vmatprep.subr.bf16.mxu1 %v3116_v27 }
 0x74f   :  { %2681 = vmatpush3.bf16.msra.mxu1 %v2907_v5 }
 0x750   :  { %2682 = vmatprep.subr.bf16.mxu1 %v3116_v27 }
 0x753   :  { %2683 = vmatpush3.bf16.msra.mxu1 %v2908_v6 }
 0x754   :  { %2684 = vmatprep.subr.bf16.mxu1 %v3116_v27 }
 0x757   :  { %2685 = vmatpush3.bf16.msra.mxu1 %v2909_v7 }
 0x758   :  { %2686 = vmatprep.subr.bf16.mxu1 %v3116_v27 }
 0x75b   :  { %2687 = vmatpush3.bf16.msra.mxu1 %v2910_v56 }
 0x75c   :  { %2688 = vmatprep.subr.bf16.mxu1 %v3116_v27 }
 0x75f   :  { %2689 = vmatpush3.bf16.msra.mxu1 %v2911_v58 }
 0x802   :  { %v2664_v53 = vpop.f32.mrf.mxu1 }
 0x803   :  { %v1134_v11 = vadd.f32 %v2664_v53, %v350_v55 }
 0x804   :  { %v1125_v8 = vpop.f32.mrf.mxu1 }
 0x805   :  { %v1126_v14 = vadd.f32 %v1125_v8, %v340_v9  ;;  %v1142_v18 = vmax.f32 %v1134_v11, 0.0 }
 0x806   :  { %v2665_v12 = vpop.f32.mrf.mxu1 }
 0x807   :  { %v1137_v15 = vadd.f32 %v2665_v12, %v354_v10  ;;  %v1140_v26 = vmax.f32 %v1126_v14, 0.0  ;;  %v2920_v14 = vld [vmem:[#allocation6 + $0xf8] sm:$0xff]  }
 0x808   :  { %v1128_v16 = vpop.f32.mrf.mxu1 }
 0x809   :  { %v1143_v22 = vmax.f32 %v1137_v15, 0.0  ;;  %v1129_v25 = vadd.f32 %v1128_v16, %v344_v13  ;;  %v2921_v15 = vld [vmem:[#allocation6 + $0xf0] sm:$0xff]   ;;  %v2922_v16 = vld [vmem:[#allocation6 + $0xe8] sm:$0xff]  }
 0x80b   :  { %v1145_v28 = vpack.c.bf16 %v1143_v22, %v1142_v18  ;;  %v1141_v30 = vmax.f32 %v1129_v25, 0.0  ;;  %v2923_v18 = vld [vmem:[#allocation6 + $0xe0] sm:$0xff]   ;;  %v2924_v22 = vld [vmem:[#allocation6 + $0xd8] sm:$0xff]   ;;  %v2925_v25 = vld [vmem:[#allocation6 + $0xd0] sm:$0xff]  }
 0x80d   :  { %v1144_v17 = vpack.c.bf16 %v1141_v30, %v1140_v26  ;;  %2667 = vmatpush3.bf16.msra.mxu0 %v1145_v28  ;;  %v202_v26 = vsub.s32 3, %v3301_v62 }
 0x80e   :  { %2668 = vmatprep.subr.bf16.mxu0 %v3116_v27 }
 0x80f   :  { %v203_v28 = vrot.slane %v3309_v1, %v202_v26 }
 0x811   :  { %2669 = vmatpush3.bf16.msra.mxu0 %v1144_v17  ;;  %v352_v17 = vadd.f32 %v3299_v61, %v203_v28  ;;  %v342_v58 = vadd.f32 %v3291_v57, %v203_v28  ;;  %v2926_v57 = vld [vmem:[#allocation6 + $0xc8] sm:$0xff]   ;;  %v2928_v61 = vld [vmem:[#allocation9 + $0xf8] sm:$0xff]  }
 0x812   :  { %2694 = vmatprep.subr.bf16.mxu0 %v3116_v27 }
 0x814   :  { %2671 = vmatmul.mubr.msk.bf16.vlgmr.msra.gmra.mxu0 %vm472_vm11, %v3322_v29 }
 0x815   :  { %2710 = vmatprep.mubr.msk.bf16.mxu0 %vm3117_vm8, %v3116_v27  ;;  %2695 = vmatpush3.bf16.msra.mxu0 %v2912_v60  ;;  %v356_v60 = vadd.f32 %v3311_v2, %v203_v28  ;;  %v2929_v2 = vld [vmem:[#allocation9 + $0xf0] sm:$0xff]  }
 0x816   :  { %2696 = vmatprep.subr.bf16.mxu0 %v3116_v27 }
 0x819   :  { %2697 = vmatpush3.bf16.msra.mxu0 %v2913_v63 }
 0x81a   :  { %2698 = vmatprep.subr.bf16.mxu0 %v3116_v27 }
 0x81d   :  { %2699 = vmatpush3.bf16.msra.mxu0 %v2914_v21 }
 0x81e   :  { %2700 = vmatprep.subr.bf16.mxu0 %v3116_v27 }
 0x821   :  { %2701 = vmatpush3.bf16.msra.mxu0 %v2915_v23  ;;  %v346_v23 = vadd.f32 %v3295_v59, %v203_v28  ;;  %v2927_v59 = vld [vmem:[#allocation6 + $0xc0] sm:$0xff]  }
 0x822   :  { %2702 = vmatprep.subr.bf16.mxu0 %v3116_v27 }
 0x825   :  { %2703 = vmatpush3.bf16.msra.mxu0 %v2916_v24 }
 0x826   :  { %2704 = vmatprep.subr.bf16.mxu0 %v3116_v27 }
 0x829   :  { %2705 = vmatpush3.bf16.msra.mxu0 %v2917_v48  ;;  %v2931_v48 = vld [vmem:[#allocation9 + $0xe0] sm:$0xff]  }
 0x82a   :  { %2706 = vmatprep.subr.bf16.mxu0 %v3116_v27 }
 0x82d   :  { %2707 = vmatpush3.bf16.msra.mxu0 %v2918_v52  ;;  %v2932_v52 = vld [vmem:[#allocation9 + $0xd8] sm:$0xff]  }
 0x82e   :  { %2708 = vmatprep.subr.bf16.mxu0 %v3116_v27 }
 0x831   :  { %2709 = vmatpush3.bf16.msra.mxu0 %v2919_v47 }
 0x832   :  { %2720 = vmatprep.subr.bf16.mxu0 %v3116_v27 }
 0x8d4   :  { %v1180_v31 = vpop.f32.mrf.mxu0 }
 0x8d5   :  { %v1191_v43 = vadd.f32 %v1189_v34, %v1180_v31 }
 0x8d6   :  { %v2672_v33 = vpop.f32.mrf.mxu0 }
 0x8d8   :  { %v1183_v36 = vpop.f32.mrf.mxu0 }
 0x8d9   :  { %v1192_v44 = vadd.f32 %v1190_v35, %v1183_v36 }
 0x8da   :  { %v2673_v45 = vpop.f32.mrf.mxu0 }
 0x8db   :  { %v1193_v46 = vpack.c.bf16 %v1192_v44, %v1191_v43 }
 0x8dd   :  { %2691 = vmatmul.mubr.bf16.vlgmr.msra.gmra.mxu1 %v1193_v46  ;;  %v2930_v46 = vld [vmem:[#allocation9 + $0xe8] sm:$0xff]  }
 0x8de   :  { %2716 = vmatprep.mubr.msk.bf16.mxu1 %vm410_vm7, %v3265_v41 }
 0x99d   :  { %v1301_v54 = vpop.f32.mrf.mxu1 }
 0x99e   :  { %v1302_v3 = vadd.f32 %v2340_v50, %v1301_v54 }
 0x99f   :  { %v2692_v0 = vpop.f32.mrf.mxu1 }
 0x9a0   :  { %v1308_v5 = vmax.f32 %v1302_v3, 0.0 }
 0x9a1   :  { %v1304_v4 = vpop.f32.mrf.mxu1 }
 0x9a2   :  { %v1305_v19 = vadd.f32 %v2340_v50, %v1304_v4  ;;  %v1525_v50 = vstv %s2361_s30 }
 0x9a3   :  { %v2693_v20 = vpop.f32.mrf.mxu1 }
 0x9a4   :  { %v1309_v6 = vmax.f32 %v1305_v19, 0.0 }
 0x9a6   :  { %v1310_v7 = vpack.c.bf16 %v1309_v6, %v1308_v5 }
 0x9a8   :  { %2711 = vmatmul.mubr.bf16.vlgmr.msra.gmra.mxu0 %v1310_v7  ;;  %v2933_v7 = vld [vmem:[#allocation9 + $0xd0] sm:$0xff]  }
 0x9a9   :  { %2724 = vmatprep.mubr.msk.bf16.mxu0 %vm3117_vm8, %v3116_v27 }
 0xa68   :  { %v1418_v51 = vpop.f32.mrf.mxu0 }
 0xa69   :  { %v3452_v55 = vadd.f32 %v2349_v49, %v1418_v51  ;;  %v2935_v51 = vld [vmem:[#allocation9 + $0xc0] sm:$0xff]  }
 0xa6a   :  { %v2712_v53 = vpop.f32.mrf.mxu0 }
 0xa6b   :  { %v1425_v11 = vmax.f32 %v3452_v55, 0.0  ;;  %v2362_v53 = vld [vmem:[#allocation8 + $0x3] ss:$0 sm:$0xff] }
 0xa6c   :  { %v1421_v8 = vpop.f32.mrf.mxu0 }
 0xa6d   :  { %v3454_v9 = vadd.f32 %v2349_v49, %v1421_v8  ;;  %v1526_v0 = vmul.f32 %v1525_v50, %v1425_v11  ;;  %v2934_v49 = vld [vmem:[#allocation9 + $0xc8] sm:$0xff]  }
 0xa6e   :  { %v2713_v10 = vpop.f32.mrf.mxu0 }
 0xa6f   :  { %v1426_v12 = vmax.f32 %v3454_v9, 0.0 }
 0xa71   :  { %v1427_v13 = vpack.c.bf16 %v1426_v12, %v1425_v11  ;;  %v1527_v3 = vmul.f32 %v1525_v50, %v1426_v12  ;;  %v2946_v50 = vld [vmem:[#allocation9 + $0x128] sm:$0xff]  }
 0xa73   :  { %2714 = vmatprep.subr.bf16.mxu1 %v1427_v13 }
 0xa74   :  { %2715 = vmatpush3.bf16.msra.mxu1 %v1427_v13 }
 0xa75   :  { %2728 = vmatprep.subr.bf16.mxu1 %v3116_v27 }
 0xa77   :  { %2717 = vmatmul.mubr.msk.bf16.vlgmr.msra.gmra.mxu1 %vm410_vm7, %v3263_v40 }
 0xa78   :  { %2744 = vmatprep.mubr.msk.bf16.mxu1 %vm3117_vm8, %v3116_v27  ;;  %2729 = vmatpush3.bf16.msra.mxu1 %v2920_v14 }
 0xa79   :  { %2730 = vmatprep.subr.bf16.mxu1 %v3116_v27 }
 0xa7c   :  { %2731 = vmatpush3.bf16.msra.mxu1 %v2921_v15  ;;  %v2371_v15 = vld [vmem:[#allocation11 + $0x3] ss:$0 sm:$0xff] }
 0xa7d   :  { %2732 = vmatprep.subr.bf16.mxu1 %v3116_v27 }
 0xa80   :  { %2733 = vmatpush3.bf16.msra.mxu1 %v2922_v16 }
 0xa81   :  { %2734 = vmatprep.subr.bf16.mxu1 %v3116_v27 }
 0xa84   :  { %2735 = vmatpush3.bf16.msra.mxu1 %v2923_v18 }
 0xa85   :  { %2736 = vmatprep.subr.bf16.mxu1 %v3116_v27 }
 0xa88   :  { %2737 = vmatpush3.bf16.msra.mxu1 %v2924_v22 }
 0xa89   :  { %2738 = vmatprep.subr.bf16.mxu1 %v3116_v27 }
 0xa8c   :  { %2739 = vmatpush3.bf16.msra.mxu1 %v2925_v25 }
 0xa8d   :  { %2740 = vmatprep.subr.bf16.mxu1 %v3116_v27 }
 0xa90   :  { %2741 = vmatpush3.bf16.msra.mxu1 %v2926_v57 }
 0xa91   :  { %2742 = vmatprep.subr.bf16.mxu1 %v3116_v27 }
 0xa94   :  { %2743 = vmatpush3.bf16.msra.mxu1 %v2927_v59 }
 0xb37   :  { %v2718_v30 = vpop.f32.mrf.mxu1 }
 0xb38   :  { %v1471_v63 = vadd.f32 %v2718_v30, %v352_v17 }
 0xb39   :  { %v1462_v56 = vpop.f32.mrf.mxu1 }
 0xb3a   :  { %v1463_v24 = vadd.f32 %v1462_v56, %v342_v58  ;;  %v1479_v33 = vmax.f32 %v1471_v63, 0.0  ;;  %v2936_v58 = vld [vmem:[#allocation6 + $0x138] sm:$0xff]   ;;  %v2938_v63 = vld [vmem:[#allocation6 + $0x128] sm:$0xff]  }
 0xb3b   :  { %v2719_v21 = vpop.f32.mrf.mxu1 }
 0xb3c   :  { %v1474_v31 = vadd.f32 %v2719_v21, %v356_v60  ;;  %v1477_v36 = vmax.f32 %v1463_v24, 0.0  ;;  %v2937_v60 = vld [vmem:[#allocation6 + $0x130] sm:$0xff]   ;;  %v2939_v21 = vld [vmem:[#allocation6 + $0x120] sm:$0xff]   ;;  %v206_v24 = vsub.s32 4, %v3301_v62 }
 0xb3d   :  { %v1465_v32 = vpop.f32.mrf.mxu1 }
 0xb3e   :  { %v1480_v34 = vmax.f32 %v1474_v31, 0.0  ;;  %v1466_v35 = vadd.f32 %v1465_v32, %v346_v23  ;;  %v2940_v23 = vld [vmem:[#allocation6 + $0x118] sm:$0xff]   ;;  %v207_v31 = vrot.slane %v3309_v1, %v206_v24 }
 0xb40   :  { %v1482_v43 = vpack.c.bf16 %v1480_v34, %v1479_v33  ;;  %v1478_v44 = vmax.f32 %v1466_v35, 0.0  ;;  %v401_v33 = vadd.f32 %v3335_v37, %v207_v31  ;;  %v404_v35 = vadd.f32 %v3339_v39, %v207_v31  ;;  %v2943_v39 = vld [vmem:[#allocation6 + $0x100] sm:$0xff]  }
 0xb42   :  { %v1481_v45 = vpack.c.bf16 %v1478_v44, %v1477_v36  ;;  %2721 = vmatpush3.bf16.msra.mxu0 %v1482_v43  ;;  %v393_v44 = vadd.f32 %v3337_v38, %v207_v31  ;;  %v2942_v38 = vld [vmem:[#allocation6 + $0x108] sm:$0xff]  }
 0xb43   :  { %2722 = vmatprep.subr.bf16.mxu0 %v3116_v27 }
 0xb46   :  { %2723 = vmatpush3.bf16.msra.mxu0 %v1481_v45  ;;  %v396_v45 = vadd.f32 %v3341_v42, %v207_v31  ;;  %v2944_v42 = vld [vmem:[#allocation9 + $0x138] sm:$0xff]  }
 0xb47   :  { %2748 = vmatprep.subr.bf16.mxu0 %v3116_v27 }
 0xb49   :  { %2725 = vmatmul.mubr.msk.bf16.vlgmr.msra.gmra.mxu0 %vm472_vm11, %v3322_v29 }
 0xb4a   :  { %2764 = vmatprep.mubr.msk.bf16.mxu0 %vm3117_vm8, %v3116_v27  ;;  %2749 = vmatpush3.bf16.msra.mxu0 %v2928_v61 }
 0xb4b   :  { %2750 = vmatprep.subr.bf16.mxu0 %v3116_v27 }
 0xb4e   :  { %2751 = vmatpush3.bf16.msra.mxu0 %v2929_v2 }
 0xb4f   :  { %2752 = vmatprep.subr.bf16.mxu0 %v3116_v27 }
 0xb52   :  { %2753 = vmatpush3.bf16.msra.mxu0 %v2930_v46 }
 0xb53   :  { %2754 = vmatprep.subr.bf16.mxu0 %v3116_v27 }
 0xb56   :  { %2755 = vmatpush3.bf16.msra.mxu0 %v2931_v48 }
 0xb57   :  { %2756 = vmatprep.subr.bf16.mxu0 %v3116_v27 }
 0xb5a   :  { %2757 = vmatpush3.bf16.msra.mxu0 %v2932_v52 }
 0xb5b   :  { %2758 = vmatprep.subr.bf16.mxu0 %v3116_v27 }
 0xb5e   :  { %2759 = vmatpush3.bf16.msra.mxu0 %v2933_v7 }
 0xb5f   :  { %2760 = vmatprep.subr.bf16.mxu0 %v3116_v27 }
 0xb62   :  { %2761 = vmatpush3.bf16.msra.mxu0 %v2934_v49 }
 0xb63   :  { %2762 = vmatprep.subr.bf16.mxu0 %v3116_v27 }
 0xb66   :  { %2763 = vmatpush3.bf16.msra.mxu0 %v2935_v51 }
 0xb67   :  { %2774 = vmatprep.subr.bf16.mxu0 %v3116_v27 }
 0xc09   :  { %v1517_v47 = vpop.f32.mrf.mxu0 }
 0xc0a   :  { %v1528_v19 = vadd.f32 %v1526_v0, %v1517_v47  ;;  %v2945_v47 = vld [vmem:[#allocation9 + $0x130] sm:$0xff]  }
 0xc0b   :  { %v2726_v54 = vpop.f32.mrf.mxu0 }
 0xc0c   :  { %v2948_v54 = vld [vmem:[#allocation9 + $0x118] sm:$0xff]  }
 0xc0d   :  { %v1520_v4 = vpop.f32.mrf.mxu0 }
 0xc0e   :  { %v1529_v20 = vadd.f32 %v1527_v3, %v1520_v4  ;;  %v1862_v3 = vstv %s2383_s15 }
 0xc0f   :  { %v2727_v5 = vpop.f32.mrf.mxu0 }
 0xc10   :  { %v1530_v6 = vpack.c.bf16 %v1529_v20, %v1528_v19 }
 0xc12   :  { %2745 = vmatmul.mubr.bf16.vlgmr.msra.gmra.mxu1 %v1530_v6 }
 0xc13   :  { %2770 = vmatprep.mubr.msk.bf16.mxu1 %vm410_vm7, %v3265_v41 }
 0xcd2   :  { %v1638_v55 = vpop.f32.mrf.mxu1 }
 0xcd3   :  { %v1639_v9 = vadd.f32 %v2362_v53, %v1638_v55  ;;  %v2950_v55 = vld [vmem:[#allocation9 + $0x108] sm:$0xff]  }
 0xcd4   :  { %v2746_v8 = vpop.f32.mrf.mxu1 }
 0xcd5   :  { %v1645_v41 = vmax.f32 %v1639_v9, 0.0  ;;  %v2951_v8 = vld [vmem:[#allocation9 + $0x100] sm:$0xff]   ;;  %v2384_v9 = vld [vmem:[#allocation8 + $0x4] ss:$0 sm:$0xff] }
 0xcd6   :  { %v1641_v10 = vpop.f32.mrf.mxu1 }
 0xcd7   :  { %v1642_v11 = vadd.f32 %v2362_v53, %v1641_v10  ;;  %v2949_v53 = vld [vmem:[#allocation9 + $0x110] sm:$0xff]  }
 0xcd8   :  { %v2747_v12 = vpop.f32.mrf.mxu1 }
 0xcd9   :  { %v1646_v13 = vmax.f32 %v1642_v11, 0.0 }
 0xcdb   :  { %v1647_v14 = vpack.c.bf16 %v1646_v13, %v1645_v41 }
 0xcdd   :  { %2765 = vmatmul.mubr.bf16.vlgmr.msra.gmra.mxu0 %v1647_v14 }
 0xcde   :  { %2778 = vmatprep.mubr.msk.bf16.mxu0 %vm3117_vm8, %v3116_v27 }
 0xd9d   :  { %v1755_v16 = vpop.f32.mrf.mxu0 }
 0xd9e   :  { %v3502_v22 = vadd.f32 %v2371_v15, %v1755_v16 }
 0xd9f   :  { %v2766_v18 = vpop.f32.mrf.mxu0 }
 0xda0   :  { %v1762_v30 = vmax.f32 %v3502_v22, 0.0  ;;  %v2952_v22 = vld [vmem:[%s3605_s11 + $0x38] sm:$0xff]  }
 0xda1   :  { %v1758_v25 = vpop.f32.mrf.mxu0 }
 0xda2   :  { %v3504_v26 = vadd.f32 %v2371_v15, %v1758_v25  ;;  %v1863_v19 = vmul.f32 %v1862_v3, %v1762_v30  ;;  %v2953_v25 = vld [vmem:[%s3605_s11 + $0x30] sm:$0xff]  }
 0xda3   :  { %v2767_v28 = vpop.f32.mrf.mxu0 }
 0xda4   :  { %v1763_v17 = vmax.f32 %v3504_v26, 0.0  ;;  %v2954_v26 = vld [vmem:[%s3605_s11 + $0x28] sm:$0xff]   ;;  %v2955_v28 = vld [vmem:[%s3605_s11 + $0x20] sm:$0xff]  }
 0xda6   :  { %v1764_v56 = vpack.c.bf16 %v1763_v17, %v1762_v30  ;;  %v1864_v20 = vmul.f32 %v1862_v3, %v1763_v17  ;;  %v2956_v30 = vld [vmem:[%s3605_s11 + $0x18] sm:$0xff]   ;;  %v2957_v17 = vld [vmem:[%s3605_s11 + $0x10] sm:$0xff]  }
 0xda8   :  { %2768 = vmatprep.subr.bf16.mxu1 %v1764_v56 }
 0xda9   :  { %2769 = vmatpush3.bf16.msra.mxu1 %v1764_v56  ;;  %v2958_v56 = vld [vmem:[%s3605_s11 + $0x8] sm:$0xff]  }
 0xdaa   :  { %2782 = vmatprep.subr.bf16.mxu1 %v3116_v27 }
 0xdac   :  { %2771 = vmatmul.mubr.msk.bf16.vlgmr.msra.gmra.mxu1 %vm410_vm7, %v3263_v40  ;;  %v2941_v40 = vld [vmem:[#allocation6 + $0x110] sm:$0xff]  }
 0xdad   :  { %2798 = vmatprep.mubr.msk.bf16.mxu1 %vm3117_vm8, %v3116_v27  ;;  %2783 = vmatpush3.bf16.msra.mxu1 %v2936_v58 }
 0xdae   :  { %2784 = vmatprep.subr.bf16.mxu1 %v3116_v27 }
 0xdb1   :  { %2785 = vmatpush3.bf16.msra.mxu1 %v2937_v60  ;;  %v2393_v60 = vld [vmem:[#allocation11 + $0x4] ss:$0 sm:$0xff] }
 0xdb2   :  { %2786 = vmatprep.subr.bf16.mxu1 %v3116_v27 }
 0xdb5   :  { %2787 = vmatpush3.bf16.msra.mxu1 %v2938_v63 }
 0xdb6   :  { %2788 = vmatprep.subr.bf16.mxu1 %v3116_v27 }
 0xdb9   :  { %2789 = vmatpush3.bf16.msra.mxu1 %v2939_v21 }
 0xdba   :  { %2790 = vmatprep.subr.bf16.mxu1 %v3116_v27 }
 0xdbd   :  { %2791 = vmatpush3.bf16.msra.mxu1 %v2940_v23 }
 0xdbe   :  { %2792 = vmatprep.subr.bf16.mxu1 %v3116_v27 }
 0xdc1   :  { %2793 = vmatpush3.bf16.msra.mxu1 %v2941_v40 }
 0xdc2   :  { %2794 = vmatprep.subr.bf16.mxu1 %v3116_v27 }
 0xdc5   :  { %2795 = vmatpush3.bf16.msra.mxu1 %v2942_v38 }
 0xdc6   :  { %2796 = vmatprep.subr.bf16.mxu1 %v3116_v27 }
 0xdc9   :  { %2797 = vmatpush3.bf16.msra.mxu1 %v2943_v39 }
 0xdca   :  { %2822 = vmatprep.subr.bf16.mxu1 %v3116_v27 }
 0xe6c   :  { %v2772_v32 = vpop.f32.mrf.mxu1 }
 0xe6d   :  { %v1808_v36 = vadd.f32 %v2772_v32, %v401_v33  ;;  %v2099_v32 = vld [vmem:[%s3604_s10] sm:$0x1]  ;;  %s3072_s10 = scalar_lea.vmem %s2264_s29, 32 }
 0xe6e   :  { %v1799_v34 = vpop.f32.mrf.mxu1  ;;  %v2959_v33 = vld [vmem:[%s3605_s11] sm:$0xff]   ;;  %p3073_p2 = scmp.ne.s32.totalorder %s2264_s29, %s3072_s10  ;;  %p3078_p4 = scmp.lt.s32.totalorder %s3072_s10, %s3072_s10 }
 0xe6f   :  { %v1816_v61 = vmax.f32 %v1808_v36, 0.0  ;;  %v1800_v2 = vadd.f32 %v1799_v34, %v393_v44  ;;  %v2403_v44 = vld [vmem:[%s3606_s12] ss:$0 sm:$0xff] }
 0xe70   :  { %v2773_v43 = vpop.f32.mrf.mxu1  ;;  %p3079_p5 = por %p3078_p4, %p3077_p3 }
 0xe71   :  { %v1811_v57 = vadd.f32 %v2773_v43, %v404_v35  ;;  %v1814_v52 = vmax.f32 %v1800_v2, 0.0 }
 0xe72   :  { %v1802_v59 = vpop.f32.mrf.mxu1  ;;  %p3080_p6 = pnand %p3079_p5, %p3073_p2 }
 0xe73   :  { %v1817_v46 = vmax.f32 %v1811_v57, 0.0  ;;  %v1803_v62 = vadd.f32 %v1802_v59, %v396_v45 }
 0xe75   :  { %v1819_v48 = vpack.c.bf16 %v1817_v46, %v1816_v61  ;;  %v1815_v1 = vmax.f32 %v1803_v62, 0.0 }
 0xe77   :  { %2775 = vmatpush3.bf16.msra.mxu0 %v1819_v48  ;;  %v1818_v37 = vpack.c.bf16 %v1815_v1, %v1814_v52 }
 0xe78   :  { %2776 = vmatprep.subr.bf16.mxu0 %v3116_v27 }
 0xe7b   :  { %2777 = vmatpush3.bf16.msra.mxu0 %v1818_v37 }
 0xe7c   :  { %2802 = vmatprep.subr.bf16.mxu0 %v3116_v27 }
 0xe7e   :  { %2779 = vmatmul.mubr.msk.bf16.vlgmr.msra.gmra.mxu0 %vm472_vm11, %v3322_v29  ;;  %v2947_v29 = vld [vmem:[#allocation9 + $0x120] sm:$0xff]  }
 0xe7f   :  { %2818 = vmatprep.mubr.msk.bf16.mxu0 %vm3117_vm8, %v3116_v27  ;;  %2803 = vmatpush3.bf16.msra.mxu0 %v2944_v42 }
 0xe80   :  { %2804 = vmatprep.subr.bf16.mxu0 %v3116_v27 }
 0xe83   :  { %2805 = vmatpush3.bf16.msra.mxu0 %v2945_v47 }
 0xe84   :  { %2806 = vmatprep.subr.bf16.mxu0 %v3116_v27 }
 0xe87   :  { %2807 = vmatpush3.bf16.msra.mxu0 %v2946_v50 }
 0xe88   :  { %2808 = vmatprep.subr.bf16.mxu0 %v3116_v27 }
 0xe8b   :  { %2809 = vmatpush3.bf16.msra.mxu0 %v2947_v29 }
 0xe8c   :  { %2810 = vmatprep.subr.bf16.mxu0 %v3116_v27 }
 0xe8f   :  { %2811 = vmatpush3.bf16.msra.mxu0 %v2948_v54 }
 0xe90   :  { %2812 = vmatprep.subr.bf16.mxu0 %v3116_v27 }
 0xe93   :  { %2813 = vmatpush3.bf16.msra.mxu0 %v2949_v53 }
 0xe94   :  { %2814 = vmatprep.subr.bf16.mxu0 %v3116_v27 }
 0xe97   :  { %2815 = vmatpush3.bf16.msra.mxu0 %v2950_v55 }
 0xe98   :  { %2816 = vmatprep.subr.bf16.mxu0 %v3116_v27 }
 0xe9b   :  { %2817 = vmatpush3.bf16.msra.mxu0 %v2951_v8 }
 0xe9c   :  { %2828 = vmatprep.subr.bf16.mxu0 %v3116_v27 }
 0xf3e   :  { %v1854_v0 = vpop.f32.mrf.mxu0 }
 0xf3f   :  { %v1865_v6 = vadd.f32 %v1863_v19, %v1854_v0 }
 0xf40   :  { %v2780_v4 = vpop.f32.mrf.mxu0 }
 0xf42   :  { %v1857_v5 = vpop.f32.mrf.mxu0 }
 0xf43   :  { %v1866_v7 = vadd.f32 %v1864_v20, %v1857_v5 }
 0xf44   :  { %v2781_v49 = vpop.f32.mrf.mxu0 }
 0xf45   :  { %v1867_v51 = vpack.c.bf16 %v1866_v7, %v1865_v6 }
 0xf47   :  { %2799 = vmatmul.mubr.bf16.vlgmr.msra.gmra.mxu1 %v1867_v51 }
 0xf48   :  { %2824 = vmatprep.mubr.msk.bf16.mxu1 %vm3117_vm8, %v3116_v27 }
0x1007   :  { %v1975_v10 = vpop.f32.mrf.mxu1 }
0x1008   :  { %v1976_v12 = vadd.f32 %v2384_v9, %v1975_v10 }
0x1009   :  { %v2800_v11 = vpop.f32.mrf.mxu1 }
0x100a   :  { %v1982_v15 = vmax.f32 %v1976_v12, 0.0 }
0x100b   :  { %v1978_v41 = vpop.f32.mrf.mxu1 }
0x100c   :  { %v1979_v13 = vadd.f32 %v2384_v9, %v1978_v41 }
0x100d   :  { %v2801_v14 = vpop.f32.mrf.mxu1 }
0x100e   :  { %v1983_v16 = vmax.f32 %v1979_v13, 0.0 }
0x1010   :  { %v1984_v18 = vpack.c.bf16 %v1983_v16, %v1982_v15 }
0x1012   :  { %2819 = vmatmul.mubr.bf16.vlgmr.msra.gmra.mxu0 %v1984_v18 }
0x1013   :  { %2844 = vmatprep.mubr.msk.bf16.mxu0 %vm3117_vm8, %v3116_v27  ;;  %2829 = vmatpush3.bf16.msra.mxu0 %v2952_v22 }
0x1014   :  { %2830 = vmatprep.subr.bf16.mxu0 %v3116_v27 }
0x1017   :  { %2831 = vmatpush3.bf16.msra.mxu0 %v2953_v25 }
0x1018   :  { %2832 = vmatprep.subr.bf16.mxu0 %v3116_v27 }
0x101b   :  { %2833 = vmatpush3.bf16.msra.mxu0 %v2954_v26 }
0x101c   :  { %2834 = vmatprep.subr.bf16.mxu0 %v3116_v27 }
0x101f   :  { %2835 = vmatpush3.bf16.msra.mxu0 %v2955_v28 }
0x1020   :  { %2836 = vmatprep.subr.bf16.mxu0 %v3116_v27 }
0x1023   :  { %2837 = vmatpush3.bf16.msra.mxu0 %v2956_v30 }
0x1024   :  { %2838 = vmatprep.subr.bf16.mxu0 %v3116_v27 }
0x1027   :  { %2839 = vmatpush3.bf16.msra.mxu0 %v2957_v17 }
0x1028   :  { %2840 = vmatprep.subr.bf16.mxu0 %v3116_v27 }
0x102b   :  { %2841 = vmatpush3.bf16.msra.mxu0 %v2958_v56 }
0x102c   :  { %2842 = vmatprep.subr.bf16.mxu0 %v3116_v27 }
0x102f   :  { %2843 = vmatpush3.bf16.msra.mxu0 %v2959_v33 }
0x10d2   :  { %v2092_v58 = vpop.f32.mrf.mxu0 }
0x10d3   :  { %v2093_v23 = vadd.f32 %v2393_v60, %v2092_v58 }
0x10d4   :  { %v2820_v63 = vpop.f32.mrf.mxu0 }
0x10d6   :  { %v2095_v21 = vpop.f32.mrf.mxu0 }
0x10d7   :  { %v2096_v40 = vadd.f32 %v2393_v60, %v2095_v21 }
0x10d8   :  { %v2821_v24 = vpop.f32.mrf.mxu0 }
0x10d9   :  { %v2100_v31 = vpack.c.bf16 %v2096_v40, %v2093_v23 }
0x10db   :  { %2823 = vmatpush3.bf16.msra.mxu1 %v2100_v31 }
0x10de   :  { %2825 = vmatmul.mubr.msk.bf16.vlgmr.msra.gmra.mxu1 %vm410_vm7, %v2099_v32 }
0x119e   :  { %v2138_v27 = vpop.f32.mrf.mxu1 }
0x119f   :  { %v2144_v34 = vpack.c.bf16 %v2138_v27, %v2138_v27 }
0x11a0   :  { %v2826_v35 = vpop.f32.mrf.mxu1 }
0x11a1   :  { %2845 = vmatmul.mubr.bf16.vlgmr.msra.gmra.mxu0 %v2144_v34 }
0x11a2   :  { %v2141_v36 = vpop.f32.mrf.mxu1 }
0x11a4   :  { %v2827_v43 = vpop.f32.mrf.mxu1 }
0x1261   :  { %v2250_v45 = vpop.f32.mrf.mxu0 }
0x1262   :  { %v2251_v57 = vadd.f32 %v2403_v44, %v2250_v45 }
0x1263   :  { %v2846_v59 = vpop.f32.mrf.mxu0 }
0x1264   :  { %2256 = vst [vmem:[#allocation13] sm:$0x3] %v2251_v57 }
0x1265   :  { %v2253_v61 = vpop.f32.mrf.mxu0 }
0x1266   :  { %3083 = shalt.err (!%p3080_p6)
}
0x1267   :  { %2266 = dma.vmem_to_hbm [thread:$0]  %s2264_s29, 32, %s3608_s14, [#allocation4]   ;;  %v2847_v2 = vpop.f32.mrf.mxu0 }
0x1268   :  { %3100 = dma.done.wait [#allocation4], 32  }
0x1269   :  { %3101 = vsyncadd [#allocation4], 4294967264 }
0x126a   :  { %2270 = vsyncpa [#allocation3], 1 }
0x126b   :  { %2271 = vsyncpa [#allocation7], 1 }
0x126c   :  { %2272 = vsyncpa [#allocation10], 1 }
0x126d   :  { %2273 = vsyncpa [#allocation4], 1 }
0x126e   :  { %2274 = vsyncpa [#allocation5], 1 }

</bundles_post_ra>
